<compile_context>
chip_gen: v6e
topology: v6e:2x2x1
jax: 0.10.0
libtpu: 0.0.40
codegen_flags: <defaults>
</compile_context>

<pallas_src>
import functools

import jax
import jax.numpy as jnp
import numpy as np
from jax.experimental import pallas as pl
from jax.experimental.pallas import tpu as pltpu

ACC_IN = 3
AUDIO_IN = 12800
HID = 256
COMB = 512
NHEAD = 4
HEAD_DIM = HID // NHEAD
FF = 2048
NCLASS = 8
EPS = 1e-5


# ---------------------------------------------------------------------------
# Kernel 1: folded audio embedding  (B,12800) @ (12800,256) + b
#   grid = (N/128 [parallel], K/6400 [arbitrary]); output block resident
#   across the K reduction; weight streamed in bf16.
# ---------------------------------------------------------------------------
def _audio_embed_kernel(x_ref, w_ref, b_ref, o_ref):
    k = pl.program_id(1)

    @pl.when(k == 0)
    def _():
        o_ref[...] = jnp.zeros_like(o_ref)

    o_ref[...] += jnp.dot(x_ref[...].astype(jnp.bfloat16), w_ref[...],
                          preferred_element_type=jnp.float32)

    @pl.when(k == pl.num_programs(1) - 1)
    def _():
        o_ref[...] += b_ref[...]


def audio_embed(x, w_bf16, b, *, tk=6400, tn=128):
    B, K = x.shape
    N = w_bf16.shape[1]
    assert K % tk == 0 and tk % 128 == 0 and N % tn == 0
    return pl.pallas_call(
        _audio_embed_kernel,
        out_shape=jax.ShapeDtypeStruct((B, N), jnp.float32),
        grid_spec=pltpu.PrefetchScalarGridSpec(
            num_scalar_prefetch=0,
            grid=(N // tn, K // tk),
            in_specs=[
                pl.BlockSpec((B, tk), lambda n, k: (0, k)),
                pl.BlockSpec((tk, tn), lambda n, k: (k, n)),
                pl.BlockSpec((1, tn), lambda n, k: (0, n)),
            ],
            out_specs=pl.BlockSpec((B, tn), lambda n, k: (0, n)),
        ),
        compiler_params=pltpu.CompilerParams(
            dimension_semantics=("parallel", "arbitrary")),
    )(x, w_bf16, b)


# ---------------------------------------------------------------------------
# Kernel 2: full encoder forward, TB samples per grid step (flattened rows)
# ---------------------------------------------------------------------------
def _layer_norm(x, g, b):
    mu = jnp.mean(x, axis=-1, keepdims=True)
    var = jnp.mean((x - mu) ** 2, axis=-1, keepdims=True)
    return (x - mu) * jax.lax.rsqrt(var + EPS) * g + b


def _encoder_kernel(acc_ref, audred_ref,
                    w_ar, b_ar,
                    w_qkv, b_qkv, w_o, b_o,
                    ln1_g, ln1_b, w_f1, b_f1, w_f2, b_f2,
                    ln2_g, ln2_b, w_fc, b_fc,
                    out_ref, *, tb, seq):
    tbs = tb * seq

    # ---- folded (acc-embedding + dim-reduction) affine, + reduced audio ----
    acc = acc_ref[...].reshape(tbs, ACC_IN)                        # (TB*S, 3)
    x = jnp.dot(acc, w_ar[...],
                preferred_element_type=jnp.float32) + b_ar[...]    # (TB*S, HID)
    x = (x.reshape(tb, seq, HID) + audred_ref[...]).reshape(tbs, HID)

    # ---- multi-head self attention (post-norm encoder layer, eval mode) ----
    # Heads handled via constant 0/1 lane masks + full-width bf16 matmuls (no
    # 64-lane activation slicing, no concatenate); samples separated with an
    # additive block-diagonal score mask built once per grid step.
    qkv = jnp.dot(x.astype(jnp.bfloat16), w_qkv[...],
                  preferred_element_type=jnp.float32) + b_qkv[...]  # (TB*S, 3H)
    q = qkv[:, 0:HID]
    k = qkv[:, HID:2 * HID].astype(jnp.bfloat16)
    v = qkv[:, 2 * HID:3 * HID].astype(jnp.bfloat16)
    scale = jnp.float32(1.0 / (HEAD_DIM ** 0.5))

    lane = jax.lax.broadcasted_iota(jnp.int32, (1, HID), 1)
    row = jax.lax.broadcasted_iota(jnp.int32, (tbs, tbs), 0)
    col = jax.lax.broadcasted_iota(jnp.int32, (tbs, tbs), 1)
    # 0 within a sample, -1e30 across samples; every row keeps its own block
    # unmasked so the softmax row max is always finite.
    attn_bias = jnp.where((row // seq) == (col // seq),
                          jnp.float32(0.0), jnp.float32(-1e30))

    def head_body(h, attn):
        m = ((lane >= h * HEAD_DIM) &
             (lane < (h + 1) * HEAD_DIM))                          # (1, HID)
        qm = (q * m.astype(jnp.float32)).astype(jnp.bfloat16)
        # q . k^T without materializing k.T (contract dim 1 of both operands)
        s = jax.lax.dot_general(qm, k, (((1,), (1,)), ((), ())),
                                preferred_element_type=jnp.float32)
        s = s * scale + attn_bias
        s = s - jnp.max(s, axis=-1, keepdims=True)
        e = jnp.exp(s)
        p = (e * pl.reciprocal(jnp.sum(e, axis=-1, keepdims=True),
                               approx=True)).astype(jnp.bfloat16)
        vm = v * m.astype(jnp.bfloat16)
        return attn + jnp.dot(p, vm, preferred_element_type=jnp.float32)

    attn = jax.lax.fori_loop(0, NHEAD, head_body,
                             jnp.zeros((tbs, HID), jnp.float32))
    attn = jnp.dot(attn.astype(jnp.bfloat16), w_o[...],
                   preferred_element_type=jnp.float32) + b_o[...]
    x = _layer_norm(x + attn, ln1_g[...], ln1_b[...])

    # ---- feed forward ----
    ff = jnp.dot(x.astype(jnp.bfloat16), w_f1[...],
                 preferred_element_type=jnp.float32) + b_f1[...]
    ff = jnp.maximum(ff, 0.0)
    ff = jnp.dot(ff.astype(jnp.bfloat16), w_f2[...],
                 preferred_element_type=jnp.float32) + b_f2[...]
    x = _layer_norm(x + ff, ln2_g[...], ln2_b[...])

    # ---- mean pool over sequence (per sample) + classifier (f32) ----
    pooled = jnp.sum(x.reshape(tb, seq, HID), axis=1) * (1.0 / seq)  # (TB, HID)
    logits = jnp.dot(pooled, w_fc[...],
                     preferred_element_type=jnp.float32) + b_fc[...]
    out_ref[...] = logits.reshape(tb, 1, NCLASS)


def _pick_tb(B, S, target=256):
    """TB*S ~ target, but always >= 2 grid steps (v7x megacore); pad if needed."""
    if B <= 1:
        return 1, B
    max_tb = max(1, min(target // max(S, 1), B // 2))
    best = 1
    for cand in range(1, max_tb + 1):
        if B % cand == 0:
            best = cand
    if best * 2 >= max_tb:           # good-enough divisor -> no padding
        return best, B
    b_pad = -(-B // max_tb) * max_tb
    return max_tb, b_pad


def encoder_forward(acc_data, aud_red, kp):
    B, S, _ = acc_data.shape
    TB, B_pad = _pick_tb(B, S)
    if B_pad != B:                    # pad awkward batch, slice logits after
        acc_data = jnp.pad(acc_data, ((0, B_pad - B), (0, 0), (0, 0)))
        aud_red = jnp.pad(aud_red, ((0, B_pad - B), (0, 0)))
    aud_red = aud_red.reshape(B_pad, 1, HID)   # 3-D so any TB is layout-legal

    def const2(shape):
        return pl.BlockSpec(shape, lambda b: (0, 0))

    in_specs = [
        pl.BlockSpec((TB, S, ACC_IN), lambda b: (b, 0, 0)),
        pl.BlockSpec((TB, 1, HID), lambda b: (b, 0, 0)),
        const2((ACC_IN, HID)), const2((1, HID)),          # folded acc affine
        const2((HID, 3 * HID)), const2((1, 3 * HID)),     # qkv proj (bf16)
        const2((HID, HID)), const2((1, HID)),             # attn out proj (bf16)
        const2((1, HID)), const2((1, HID)),               # ln1
        const2((HID, FF)), const2((1, FF)),               # ffn linear1 (bf16)
        const2((FF, HID)), const2((1, HID)),              # ffn linear2 (bf16)
        const2((1, HID)), const2((1, HID)),               # ln2
        const2((HID, NCLASS)), const2((1, NCLASS)),       # fc (f32)
    ]
    weights = (kp['w_accred'], kp['b_accred'],
               kp['w_qkv'], kp['b_qkv'], kp['w_o'], kp['b_o'],
               kp['ln1_g'], kp['ln1_b'], kp['w_f1'], kp['b_f1'],
               kp['w_f2'], kp['b_f2'], kp['ln2_g'], kp['ln2_b'],
               kp['w_fc'], kp['b_fc'])

    kernel = functools.partial(_encoder_kernel, tb=TB, seq=S)
    out = pl.pallas_call(
        kernel,
        out_shape=jax.ShapeDtypeStruct((B_pad, 1, NCLASS), jnp.float32),
        grid_spec=pltpu.PrefetchScalarGridSpec(
            num_scalar_prefetch=0,
            grid=(B_pad // TB,),
            in_specs=in_specs,
            out_specs=pl.BlockSpec((TB, 1, NCLASS), lambda b: (b, 0, 0)),
        ),
        compiler_params=pltpu.CompilerParams(
            dimension_semantics=("parallel",),
            vmem_limit_bytes=32 * 1024 * 1024),
    )(acc_data, aud_red, *weights)
    return out.reshape(B_pad, NCLASS)[:B]


# ---------------------------------------------------------------------------
# Host-side weight preparation (one time): affine folds + bf16 casts
# ---------------------------------------------------------------------------
def prepare_params(p):
    w_red_acc = p['w_red'][:HID]                 # acc half of dim_reduction
    w_red_aud = p['w_red'][HID:]                 # audio half of dim_reduction
    return {
        # acc_embedding ∘ dim_reduction(acc half)  — exact f32 fold
        'w_accred': p['w_acc'] @ w_red_acc,
        'b_accred': p['b_acc'] @ w_red_acc + p['b_red'],
        # audio_embedding ∘ dim_reduction(audio half) — f32 fold, bf16 storage
        'w_aud_fold': (p['w_aud'] @ w_red_aud).astype(jnp.bfloat16),
        'b_aud_fold': p['b_aud'] @ w_red_aud,
        # bf16 weights for the MXU-heavy encoder matmuls (f32 accumulation)
        'w_qkv': p['w_qkv'].astype(jnp.bfloat16), 'b_qkv': p['b_qkv'],
        'w_o':   p['w_o'].astype(jnp.bfloat16),   'b_o':   p['b_o'],
        'w_f1':  p['w_f1'].astype(jnp.bfloat16),  'b_f1':  p['b_f1'],
        'w_f2':  p['w_f2'].astype(jnp.bfloat16),  'b_f2':  p['b_f2'],
        'ln1_g': p['ln1_g'], 'ln1_b': p['ln1_b'],
        'ln2_g': p['ln2_g'], 'ln2_b': p['ln2_b'],
        'w_fc':  p['w_fc'],  'b_fc':  p['b_fc'],
    }


def model_forward(acc_data, audio_data, kp):
    aud_red = audio_embed(audio_data, kp['w_aud_fold'], kp['b_aud_fold'])
    return encoder_forward(acc_data, aud_red, kp)


# ---------------------------------------------------------------------------
# Pure-JAX f32 reference (unfolded, same math as the PyTorch module, eval mode)
# ---------------------------------------------------------------------------
def reference_forward(acc_data, audio_data, p):
    acc_emb = acc_data @ p['w_acc'] + p['b_acc']
    aud_emb = audio_data @ p['w_aud'] + p['b_aud']
    B, S, _ = acc_emb.shape
    aud_exp = jnp.broadcast_to(aud_emb[:, None, :], (B, S, HID))
    x = jnp.concatenate([acc_emb, aud_exp], axis=-1) @ p['w_red'] + p['b_red']

    qkv = x @ p['w_qkv'] + p['b_qkv']
    q, k, v = jnp.split(qkv, 3, axis=-1)

    def split_heads(t):
        return t.reshape(B, S, NHEAD, HEAD_DIM).transpose(0, 2, 1, 3)

    qh, kh, vh = map(split_heads, (q, k, v))
    s = jnp.einsum('bhqd,bhkd->bhqk', qh, kh) / (HEAD_DIM ** 0.5)
    a = jax.nn.softmax(s, axis=-1)
    o = jnp.einsum('bhqk,bhkd->bhqd', a, vh)
    o = o.transpose(0, 2, 1, 3).reshape(B, S, HID)
    attn = o @ p['w_o'] + p['b_o']

    def ln(y, g, b):
        mu = y.mean(-1, keepdims=True)
        var = ((y - mu) ** 2).mean(-1, keepdims=True)
        return (y - mu) * jax.lax.rsqrt(var + EPS) * g + b

    x = ln(x + attn, p['ln1_g'], p['ln1_b'])
    ff = jnp.maximum(x @ p['w_f1'] + p['b_f1'], 0.0) @ p['w_f2'] + p['b_f2']
    x = ln(x + ff, p['ln2_g'], p['ln2_b'])
    return x.mean(axis=1) @ p['w_fc'] + p['b_fc']


# ---------------------------------------------------------------------------
def init_params(key):
    ks = jax.random.split(key, 16)

    def w(k, shape, scale=0.02):
        return jax.random.normal(k, shape, jnp.float32) * scale

    return {
        'w_acc': w(ks[0], (ACC_IN, HID)),   'b_acc': w(ks[1], (1, HID)),
        'w_aud': w(ks[2], (AUDIO_IN, HID)), 'b_aud': w(ks[3], (1, HID)),
        'w_red': w(ks[4], (COMB, HID)),     'b_red': w(ks[5], (1, HID)),
        'w_qkv': w(ks[6], (HID, 3 * HID)),  'b_qkv': w(ks[7], (1, 3 * HID)),
        'w_o':   w(ks[8], (HID, HID)),      'b_o':   w(ks[9], (1, HID)),
        'ln1_g': jnp.ones((1, HID), jnp.float32),
        'ln1_b': jnp.zeros((1, HID), jnp.float32),
        'w_f1':  w(ks[10], (HID, FF)),      'b_f1':  w(ks[11], (1, FF)),
        'w_f2':  w(ks[12], (FF, HID)),      'b_f2':  w(ks[13], (1, HID)),
        'ln2_g': jnp.ones((1, HID), jnp.float32),
        'ln2_b': jnp.zeros((1, HID), jnp.float32),
        'w_fc':  w(ks[14], (HID, NCLASS)),  'b_fc':  w(ks[15], (1, NCLASS)),
    }


if __name__ == "__main__":
    key = jax.random.PRNGKey(0)
    k_acc, k_aud, k_par = jax.random.split(key, 3)

    B, S = 2, 8
    acc_data = jax.random.normal(k_acc, (B, S, ACC_IN), jnp.float32)
    audio_data = jax.random.normal(k_aud, (B, AUDIO_IN), jnp.float32)
    params = init_params(k_par)
    kparams = prepare_params(params)

    logits = jax.block_until_ready(model_forward(acc_data, audio_data, kparams))
    assert logits.shape == (B, NCLASS)

    ref = jax.block_until_ready(reference_forward(acc_data, audio_data, params))
    # tolerance relaxed: kernel runs bf16-weight matmuls (f32 accumulate) and
    # an approx-EUP reciprocal in the softmax; reference is full f32.
    np.testing.assert_allclose(np.asarray(logits), np.asarray(ref),
                               rtol=3e-2, atol=3e-2)

    print("KERNEL_OK")
</pallas_src>

<mosaic_0001>
module attributes {stable_mosaic.version = 11 : i64} {
  func.func @_audio_embed_kernel(%arg0: i32, %arg1: i32, %arg2: memref<2x6400xf32, #tpu.memory_space<vmem>>, %arg3: memref<6400x128xbf16, #tpu.memory_space<vmem>>, %arg4: memref<1x128xf32, #tpu.memory_space<vmem>>, %arg5: memref<2x128xf32, #tpu.memory_space<vmem>>) attributes {dimension_semantics = [#tpu.dimension_semantics<parallel>, #tpu.dimension_semantics<arbitrary>], iteration_bounds = array<i64: 2, 2>, scalar_prefetch = 0 : i64, scratch_operands = 0 : i64, tpu.core_type = #tpu.core_type<tc>, window_params = [{transform_indices = @transform_0, window_bounds = array<i64: 2, 6400>}, {transform_indices = @transform_1, window_bounds = array<i64: 6400, 128>}, {transform_indices = @transform_2, window_bounds = array<i64: 1, 128>}, {transform_indices = @transform_3, window_bounds = array<i64: 2, 128>}]} {
    %c0_i32 = arith.constant 0 : i32
    %0 = arith.cmpi eq, %arg1, %c0_i32 : i32
    %1 = arith.extui %0 : i1 to i32
    %c0_i32_0 = arith.constant 0 : i32
    %2 = arith.cmpi ne, %1, %c0_i32_0 : i32
    scf.if %2 {
      %cst_9 = arith.constant 0.000000e+00 : f32
      %13 = vector.broadcast %cst_9 : f32 to vector<2x128xf32>
      %c0_10 = arith.constant 0 : index
      %c0_11 = arith.constant 0 : index
      %14 = vector.load %arg5[%c0_10, %c0_11] : memref<2x128xf32, #tpu.memory_space<vmem>>, vector<2x128xf32>
      tpu.vector_store %arg5[%c0_10, %c0_11], %13 {strides = array<i32>} : memref<2x128xf32, #tpu.memory_space<vmem>>, vector<2x128xf32>,
    } else {
    }
    %c0 = arith.constant 0 : index
    %c0_1 = arith.constant 0 : index
    %3 = vector.load %arg5[%c0, %c0_1] : memref<2x128xf32, #tpu.memory_space<vmem>>, vector<2x128xf32>
    %c0_2 = arith.constant 0 : index
    %c0_3 = arith.constant 0 : index
    %4 = vector.load %arg2[%c0_2, %c0_3] : memref<2x6400xf32, #tpu.memory_space<vmem>>, vector<2x6400xf32>
    %5 = arith.truncf %4 : vector<2x6400xf32> to vector<2x6400xbf16>
    %c0_4 = arith.constant 0 : index
    %c0_5 = arith.constant 0 : index
    %6 = vector.load %arg3[%c0_4, %c0_5] : memref<6400x128xbf16, #tpu.memory_space<vmem>>, vector<6400x128xbf16>
    %cst = arith.constant dense<0.000000e+00> : vector<2x128xf32>
    %7 = tpu.matmul %5, %6, %cst {dimension_numbers = #tpu.dot_dimension_numbers<[1], [0], [0], [1], [0, 0, 1, 1], [], []>} : vector<2x6400xbf16>, vector<6400x128xbf16>, vector<2x128xf32> -> vector<2x128xf32>
    %8 = arith.addf %3, %7 : vector<2x128xf32>
    %c0_6 = arith.constant 0 : index
    %c0_7 = arith.constant 0 : index
    %9 = vector.load %arg5[%c0_6, %c0_7] : memref<2x128xf32, #tpu.memory_space<vmem>>, vector<2x128xf32>
    tpu.vector_store %arg5[%c0_6, %c0_7], %8 {strides = array<i32>} : memref<2x128xf32, #tpu.memory_space<vmem>>, vector<2x128xf32>,
    %c1_i32 = arith.constant 1 : i32
    %10 = arith.cmpi eq, %arg1, %c1_i32 : i32
    %11 = arith.extui %10 : i1 to i32
    %c0_i32_8 = arith.constant 0 : i32
    %12 = arith.cmpi ne, %11, %c0_i32_8 : i32
    scf.if %12 {
      %c0_9 = arith.constant 0 : index
      %c0_10 = arith.constant 0 : index
      %13 = vector.load %arg5[%c0_9, %c0_10] : memref<2x128xf32, #tpu.memory_space<vmem>>, vector<2x128xf32>
      %c0_11 = arith.constant 0 : index
      %c0_12 = arith.constant 0 : index
      %14 = vector.load %arg4[%c0_11, %c0_12] : memref<1x128xf32, #tpu.memory_space<vmem>>, vector<1x128xf32>
      %15 = vector.broadcast %14 : vector<1x128xf32> to vector<2x128xf32>
      %16 = arith.addf %13, %15 : vector<2x128xf32>
      %c0_13 = arith.constant 0 : index
      %c0_14 = arith.constant 0 : index
      %17 = vector.load %arg5[%c0_13, %c0_14] : memref<2x128xf32, #tpu.memory_space<vmem>>, vector<2x128xf32>
      tpu.vector_store %arg5[%c0_13, %c0_14], %16 {strides = array<i32>} : memref<2x128xf32, #tpu.memory_space<vmem>>, vector<2x128xf32>,
    } else {
    }
    return
  }
  func.func @transform_0(%arg0: i32, %arg1: i32) -> (i32, i32) {
    %c0_i32 = arith.constant 0 : i32
    %c0_i32_0 = arith.constant 0 : i32
    return %c0_i32, %arg1 : i32, i32
  }
  func.func @transform_1(%arg0: i32, %arg1: i32) -> (i32, i32) {
    %c0_i32 = arith.constant 0 : i32
    return %arg1, %arg0 : i32, i32
  }
  func.func @transform_2(%arg0: i32, %arg1: i32) -> (i32, i32) {
    %c0_i32 = arith.constant 0 : i32
    %c0_i32_0 = arith.constant 0 : i32
    return %c0_i32, %arg0 : i32, i32
  }
  func.func @transform_3(%arg0: i32, %arg1: i32) -> (i32, i32) {
    %c0_i32 = arith.constant 0 : i32
    %c0_i32_0 = arith.constant 0 : i32
    return %c0_i32, %arg0 : i32, i32
  }
}

</mosaic_0001>

<bundles_post_ra>
// kernel: tpu_custom_call.1
= control target key start
LH: loop header
LB: loop body
LE: loop exit
PB: predicated region body
PF: predicated region fallthrough
CT: control target
= control target key end

     0   :  { %s7565_s0 = inlined_call_operand.hbm [shape: f32[2,12800], index: 0, kind: input, shape index: {}]   ;;  %s7566_s1 = inlined_call_operand.hbm [shape: bf16[12800,256], index: 1, kind: input, shape index: {}]   ;;  %s7567_s2 = inlined_call_operand.hbm [shape: f32[1,256], index: 2, kind: input, shape index: {}]   ;;  %s7568_s3 = inlined_call_operand.hbm [shape: f32[2,256], index: 3, kind: output, shape index: {}]  }
   0x1   :  { %7578 = sst [smem:[#allocation20_spill]] %s7565_s0 }
   0x2   :  { %7579 = sst [smem:[#allocation21_spill]] %s7566_s1 }
   0x3   :  { %7580 = sst [smem:[#allocation22_spill]] %s7568_s3 }
   0x4   :  { %8 = vsyncpa [#allocation3], 0 }
   0x5   :  { %10 = vsyncpa [#allocation3 + $0x1], 0 }
   0x6   :  { %11 = vsyncpa [#allocation6], 0 }
   0x7   :  { %13 = vsyncpa [#allocation6 + $0x1], 0 }
   0x8   :  { %14 = vsyncpa [#allocation4], 0 }
   0x9   :  { %16 = vsyncpa [#allocation4 + $0x1], 0  ;;  %s6768_s12 = smov 0   ;;  %s6770_s13 = smov 0  }
   0xa   :  { %s6772_s14 = smov 0   ;;  %s6774_s15 = smov 0  }
   0xb   :  { %s6776_s16 = smov 0   ;;  %s6778_s17 = smov 0  }
   0xc   :  { %s6780_s18 = smov 0   ;;  %s6782_s19 = smov 0  }
   0xd   :  { %s6784_s20 = smov 0   ;;  %s6786_s21 = smov 0  }
   0xe   :  { %s6788_s22 = smov 0   ;;  %s6790_s23 = smov 0  }
   0xf   :  { %s6792_s24 = smov 0   ;;  %s6794_s25 = smov 0  }
  0x10 LB: > { %7581 = sst [smem:[#allocation13_spill]] %s6717_s20  ;;  %s31_s26 = sadd.s32 1, %s6729_s23  ;;  %s6737_s25 = sphi %s6794_s25, %s22_s25   ;;  %s6733_s24 = sphi %s6792_s24, %s7619_s24   ;;  %s6729_s23 = sphi %s6790_s23, %s7629_s23   ;;  %s6725_s22 = sphi %s6788_s22, %s7617_s22   ;;  %s6721_s21 = sphi %s6786_s21, %s7628_s21   ;;  %s6717_s20 = sphi %s6784_s20, %s7616_s20   ;;  %s6713_s19 = sphi %s6782_s19, %s7627_s19   ;;  %s6709_s18 = sphi %s6780_s18, %s7626_s18   ;;  %s6705_s17 = sphi %s6778_s17, %s7625_s17   ;;  %s6701_s16 = sphi %s6776_s16, %s7624_s16   ;;  %s6697_s15 = sphi %s6774_s15, %s7623_s15   ;;  %s6693_s14 = sphi %s6772_s14, %s7622_s14   ;;  %s6689_s13 = sphi %s6770_s13, %s7621_s13   ;;  %s6685_s12 = sphi %s6768_s12, %s7620_s12  }
  0x11   : > { %7582 = sst [smem:[#allocation14_spill]] %s6721_s21  ;;  %p6840_p0 = scmp.ge.s32.totalorder %s31_s26, 2 }
  0x12   : > { %7583 = sst [smem:[#allocation15_spill]] %s6725_s22  ;;  %p49_p1 = scmp.eq.s32.totalorder %s6737_s25, 0 }
  0x13   : > { %7584 = sst [smem:[#allocation16_spill]] %s6733_s24  ;;  %p76_p2 = scmp.ne.s32.totalorder %s6705_s17, %s6701_s16 }
  0x14   : > { %s7631_s26 = smov (%p6840_p0, %s31_s26), 0  ;;  %p82_p4 = scmp.ne.s32.totalorder %s6701_s16, %s6697_s15 }
  0x15   : > { %7586 = sst [smem:[#allocation17_spill]] %s7631_s26  ;;  %p78_p3 = por %p76_p2, %p49_p1 }
  0x16   : > { %p5970_p5 = scmp.lt.s32.totalorder %s6737_s25, 4  ;;  %s7570_s30 = smul.u32 1600, %s6729_s23 }
  0x17   : > { %s177_s4 = sand.u32 1, %s6737_s25   ;;  %s179_s5 = sand.u32 1, %s6705_s17  }
  0x18   : > { %s5945_s6 = smul.u32 3200, %s179_s5  ;;  %s187_s7 = sadd.s32 %s6733_s24, %s7570_s30 }
  0x19   : > { %s4980_s8 = sshll.u32 %s187_s7, 6  ;;  %p6865_p6 = pnand %p5970_p5, %p78_p3 }
  0x1a   : > { %s7588_s1 = sld [smem:[#allocation21_spill]]  ;;  %s181_s27 = scalar_lea.vmem [#allocation5], %s5945_s6 }
  0x1b   : > { %s190_s3 = sshll.u32 %s181_s27, 4  ;;  %s6872_s22 = scalar_lea.sflag [#allocation6], %s177_s4  ;;  %s191_s3 = int_to_ptr.vmem [resolvable:$true] %s190_s3 }
  0x1c   : > { %p6503_p7 = pneg %p6865_p6  ;;  %s6514_s5 = scalar_lea.vmem %s191_s3, 51200 }
  0x1d   : > { %p6515_p8 = scmp.ne.s32.totalorder %s191_s3, %s6514_s5  ;;  %s6739_s7 = smov [#allocation5]  }
  0x1e   : > { %s6519_s30 = sshll.u32 %s6739_s7, 4  ;;  %s6520_s30 = int_to_ptr.vmem [resolvable:$false] %s6519_s30 }
  0x1f   : > { %p6517_p9 = pnand %p6515_p8, %p6503_p7  ;;  %s6521_s21 = scalar_lea.vmem %s6520_s30, 102400 }
  0x20   : > { %s189_s29 = scalar_lea.hbm %s7588_s1, %s4980_s8  ;;  %p6522_p11 = scmp.lt.s32.totalorder %s191_s3, %s6520_s30 }
  0x21   : > { %p6518_p10 = pneg %p6517_p9  ;;  %p6523_p12 = scmp.lt.s32.totalorder %s6521_s21, %s6514_s5 }
  0x23   : > { %p6524_p13 = por %p6523_p12, %p6522_p11 }
  0x25   : > { %p6525_p2 = pnand %p6524_p13, %p6518_p10 }
  0x27   : > { %6528 = shalt.err (!%p6525_p2)
}
  0x28   : > { %s6740_s6 = smov 128   ;;  %s6741_s21 = smov 64  }
  0x29   : > { %s6742_s27 = smov 4   ;;  %p4982_p3 = scmp.ge.s32.totalorder %s6737_s25, 1 }
  0x2a   : > { %5962 = dma.hbm_to_vmem [thread:$0]  (!%p6865_p6), %s189_s29, 51200, %s191_s3, %s6872_s22, %s6740_s6, %s6741_s21, %s6742_s27  }
  0x2b   : > { %p215_p7 = scmp.lt.s32.totalorder %s6737_s25, 5  ;;  %s6886_s4 = sadd.s32 4294967295, %s6737_s25  }
  0x2c   : > { %s7590_s8 = sadd.s32 1, %s6733_s24  ;;  %s38_s9 = ssub.s32 %s6729_s23, %s7631_s26 }
  0x2d   : > { %p6881_p8 = pnand %p4982_p3, %p215_p7  ;;  %s7633_s8 = smov (!%p6840_p0, %s7590_s8), %s6733_s24 }
  0x2e   : > { %s41_s3 = sadd.s32 1, %s6717_s20  ;;  %p36_p6 = scmp.ge.s32.totalorder %s7633_s8, 2 }
  0x2f   : > { %p39_p9 = scmp.eq.s32.totalorder %s38_s9, 0  ;;  %p48_p10 = scmp.ne.s32.totalorder %s6717_s20, %s6713_s19 }
  0x30   : > { %p54_p11 = scmp.ne.s32.totalorder %s6713_s19, %s6709_s18  ;;  %s7635_s8 = smov (%p36_p6, %s7633_s8), 0 }
  0x31   : > { %7591 = sst [smem:[#allocation18_spill]] %s7635_s8  ;;  %p6907_p0 = por %p49_p1, %p48_p10 }
  0x32   : > { %s6903_s28 = scalar_select %p39_p9, %s6717_s20, %s41_s3  }
  0x33   : > { %p7574_p12 = scmp.eq.s32.totalorder %s6886_s4, 0  ;;  %s6914_s10 = ssub.s32 %s6733_s24, %s7635_s8 }
  0x34   : > { %7592 = sst [smem:[#allocation19_spill]] %s6903_s28  ;;  %s158_s11 = sand.u32 1, %s6717_s20  }
  0x35   : > { %p6919_p13 = por %p7574_p12, %p54_p11  ;;  %s66_s5 = sor.u32 %s6914_s10, %s38_s9 }
  0x36   : > { %p67_p2 = scmp.eq.s32.totalorder %s66_s5, 0  ;;  %p6929_p3 = por %p82_p4, %p7574_p12 }
  0x37   : > { %s5944_s6 = smul.u32 100, %s158_s11  ;;  %s7596_s21 = sadd.s32 1, %s6705_s17 }
  0x38   : > { %s6936_s27 = scalar_select %p67_p2, %s6705_s17, %s7596_s21  }
  0x39   : > { %s7597_s3 = smul.u32 1600, %s6729_s23  ;;  %s7598_s0 = sld [smem:[#allocation20_spill]] }
  0x3a   : > { %s162_s28 = scalar_lea.vmem [#allocation2], %s5944_s6  ;;  %p6947_p7 = pnand %p5970_p5, %p6907_p0 }
  0x3b   : > { %s170_s20 = sshll.u32 %s162_s28, 4  ;;  %s159_s15 = scalar_lea.sflag [#allocation3], %s158_s11  ;;  %s171_s20 = int_to_ptr.vmem [resolvable:$true] %s170_s20 }
  0x3c   : > { %p6531_p4 = pneg %p6947_p7  ;;  %s6542_s5 = scalar_lea.vmem %s171_s20, 1600 }
  0x3d   : > { %p6543_p6 = scmp.ne.s32.totalorder %s171_s20, %s6542_s5  ;;  %s6743_s21 = smov [#allocation2]  }
  0x3e   : > { %s6547_s1 = sshll.u32 %s6743_s21, 4  ;;  %s6548_s1 = int_to_ptr.vmem [resolvable:$false] %s6547_s1 }
  0x3f   : > { %s168_s26 = scalar_lea.hbm %s7598_s0, %s7597_s3  ;;  %p6545_p9 = pnand %p6543_p6, %p6531_p4 }
  0x40   : > { %s6549_s8 = scalar_lea.vmem %s6548_s1, 3200  ;;  %p6550_p11 = scmp.lt.s32.totalorder %s171_s20, %s6548_s1 }
  0x41   : > { %p6546_p10 = pneg %p6545_p9  ;;  %p6551_p2 = scmp.lt.s32.totalorder %s6549_s8, %s6542_s5 }
  0x43   : > { %p6552_p12 = por %p6551_p2, %p6550_p11 }
  0x45   : > { %p6553_p0 = pnand %p6552_p12, %p6546_p10 }
  0x47   : > { %6556 = shalt.err (!%p6553_p0)
}
  0x48   : > { %5959 = dma.hbm_to_vmem [thread:$0]  (!%p6947_p7), %s168_s26, 1600, %s171_s20, %s159_s15  }
  0x49   : > { %s4975_s28 = sadd.s32 4294967294, %s6737_s25   ;;  %p93_p4 = scmp.eq.s32.totalorder %s6914_s10, 0 }
  0x4a   : > { %s95_s29 = sadd.s32 1, %s6693_s14  ;;  %p102_p12 = scmp.ne.s32.totalorder %s6693_s14, %s6689_s13 }
  0x4b   : > { %s6961_s11 = scalar_select %p93_p4, %s6693_s14, %s95_s29  }
  0x4c   : > { %p6965_p6 = por %p102_p12, %p49_p1  ;;  %p108_p9 = scmp.ne.s32.totalorder %s6689_s13, %s6685_s12 }
  0x4d   : > { %p132_p10 = scmp.eq.s32.totalorder %s6886_s4, 3  ;;  %p138_p11 = scmp.eq.s32.totalorder %s4975_s28, 3 }
  0x4e   : > { %p7601_p2 = scmp.eq.s32.totalorder %s6886_s4, 0  ;;  %s202_s20 = sand.u32 1, %s6693_s14  }
  0x4f   : > { %p6979_p7 = por %p132_p10, %p102_p12  ;;  %p6983_p4 = por %p138_p11, %p108_p9 }
  0x50   : > { %p6974_p0 = por %p108_p9, %p7601_p2  ;;  %s4981_s9 = sshll.u32 %s6733_s24, 4 }
  0x51   : > { %s7603_s26 = scalar_select %p6979_p7, 1, 0 }
  0x52   : > { %s7602_s3 = scalar_select %p6974_p0, 1, 0 }
  0x53   : > { %s7604_s10 = scalar_select %p6983_p4, 1, 0 }
  0x54   : > { %s208_s21 = scalar_lea.hbm %s7567_s2, %s4981_s9  ;;  %s203_s1 = scalar_lea.vmem [#allocation7], %s202_s20 }
  0x55   : > { %s210_s8 = sshll.u32 %s203_s1, 4  ;;  %p6995_p1 = pnand %p5970_p5, %p6965_p6  ;;  %s211_s8 = int_to_ptr.vmem [resolvable:$true] %s210_s8 }
  0x56   : > { %s6570_s29 = scalar_lea.vmem %s211_s8, 16  ;;  %s6744_s0 = smov [#allocation7]  }
  0x57   : > { %p6559_p12 = pneg %p6995_p1  ;;  %p6571_p9 = scmp.ne.s32.totalorder %s211_s8, %s6570_s29 }
  0x58   : > { %s6575_s24 = sshll.u32 %s6744_s0, 4  ;;  %s6576_s24 = int_to_ptr.vmem [resolvable:$false] %s6575_s24 }
  0x59   : > { %p6573_p10 = pnand %p6571_p9, %p6559_p12  ;;  %s6577_s9 = scalar_lea.vmem %s6576_s24, 32 }
  0x5a   : > { %p6578_p2 = scmp.lt.s32.totalorder %s211_s8, %s6576_s24  ;;  %p6579_p4 = scmp.lt.s32.totalorder %s6577_s9, %s6570_s29 }
  0x5b   : > { %p6574_p11 = pneg %p6573_p10 }
  0x5c   : > { %p6580_p7 = por %p6579_p4, %p6578_p2 }
  0x5e   : > { %p6581_p0 = pnand %p6580_p7, %p6574_p11 }
  0x60   : > { %6584 = shalt.err (!%p6581_p0)
}
  0x61   : > { %5965 = dma.hbm_to_vmem [thread:$0]  (!%p6995_p1), %s208_s21, 16, %s211_s8, %s6872_s22  }
  0x62   : > { %219 = sbr.rel (%p6881_p8) target bundleno = 783 (0x30f), region = 32  ;;  %s221_s6 = sand.u32 (!%p6881_p8), 1, %s6713_s19  }
  0x63   : > { %s5946_s20 = smul.u32 (!%p6881_p8), 100, %s221_s6  ;;  %s222_s15 = scalar_lea.sflag (!%p6881_p8), [#allocation3], %s221_s6 }
  0x65   : > { %s7007_s0 = scalar_lea.vmem (!%p6881_p8), [#allocation2], %s5946_s20 }
  0x67   : > { %6668 = dma.done.wait (%p6919_p13), %s222_s15, 1600  }
  0x68   : > { %6670 = vsyncadd (%p6919_p13), %s222_s15, 4294965696  ;;  %s230_s24 = sand.u32 1, %s6886_s4   ;;  %s232_s22 = sand.u32 1, %s6701_s16  }
  0x69   : > { %s5947_s5 = smul.u32 3200, %s232_s22  ;;  %s231_s30 = scalar_lea.sflag [#allocation6], %s230_s24 }
  0x6b   : > { %s7015_s21 = scalar_lea.vmem [#allocation5], %s5947_s5 }
  0x6c   : > { %6672 = dma.done.wait (%p6929_p3), %s231_s30, 51200  }
  0x6d   : > { %6674 = vsyncadd (%p6929_p3), %s231_s30, 4294916096  ;;  %s7022_s1 = sand.u32 1, %s6689_s13   ;;  %p7606_p5 = scmp.ne.s32.totalorder %s7602_s3, 0 }
  0x6e   : > { %s242_s18 = scalar_lea.vmem [#allocation7], %s7022_s1 }
  0x6f   : > { %6676 = dma.done.wait (%p7606_p5), %s231_s30, 16  }
  0x70   : > { %6678 = vsyncadd (%p7606_p5), %s231_s30, 4294967280  ;;  %s4983_s4 = sshll.u32 %s7022_s1, 1  ;;  %s7607_s28 = sld [smem:[#allocation14_spill]] }
  0x71   : > { %s7030_s8 = scalar_lea.vmem [#allocation8], %s4983_s4 }
  0x76   : > { %p4984_p8 = scmp.ne.s32.totalorder %s7607_s28, 0 }
  0x78   : > { %280 = sbr.rel (%p4984_p8) target bundleno = 127 (0x7f), region = 48 }
  0x7d   : > { %v6745_v0 = vmov 0.0  }
  0x7e   : > { %281 = vst [vmem:[%s7030_s8] sm:$0x3] %v6745_v0 }
  0x7f PF: > { %v6089_v1 = vld [vmem:[%s7015_s21 + $0x78] sm:$0xff]   ;;  %v6093_v5 = vld [vmem:[%s7015_s21 + $0x70] sm:$0xff]   ;;  %v6097_v9 = vld [vmem:[%s7015_s21 + $0x68] sm:$0xff]   ;;  %v313_v29 = vlaneseq  ;;  %v6746_v37 = vmov 1983009808   ;;  %s7608_s7 = sld [smem:[#allocation14_spill]] }
  0x80   : > { %v6090_v2 = vld [vmem:[%s7015_s21 + $0xf8] sm:$0xff]   ;;  %5394 = vmatprep.subr.bf16.mxu0 %v6089_v1  ;;  %v6094_v6 = vld [vmem:[%s7015_s21 + $0xf0] sm:$0xff]   ;;  %v6098_v10 = vld [vmem:[%s7015_s21 + $0xe8] sm:$0xff]   ;;  %v311_v38 = vunpack.c.l.s4 %v6746_v37 }
  0x81   : > { %v6091_v3 = vld [vmem:[%s7015_s21 + $0x38] sm:$0xff]   ;;  %5416 = vmatprep.subr.bf16.mxu1 %v6090_v2  ;;  %v6095_v7 = vld [vmem:[%s7015_s21 + $0x30] sm:$0xff]   ;;  %v6099_v11 = vld [vmem:[%s7015_s21 + $0x28] sm:$0xff]   ;;  %v314_v34 = vshrl.u32 %v313_v29, 7 }
  0x82   : > { %v6092_v4 = vld [vmem:[%s7015_s21 + $0xb8] sm:$0xff]   ;;  %5395 = vmatpush3.bf16.msra.mxu0 %v6091_v3  ;;  %v6096_v8 = vld [vmem:[%s7015_s21 + $0xb0] sm:$0xff]   ;;  %v6100_v12 = vld [vmem:[%s7015_s21 + $0xa8] sm:$0xff]   ;;  %v312_v39 = vunpack.c.0.s8 %v311_v38 }
  0x83   : > { %5417 = vmatpush3.bf16.msra.mxu1 %v6092_v4  ;;  %5396 = vmatprep.subr.bf16.mxu0 %v6093_v5  ;;  %v6101_v13 = vld [vmem:[%s7015_s21 + $0x60] sm:$0xff]   ;;  %v6105_v17 = vld [vmem:[%s7015_s21 + $0x58] sm:$0xff]   ;;  %v6109_v21 = vld [vmem:[%s7015_s21 + $0x50] sm:$0xff]  }
  0x84   : > { %5418 = vmatprep.subr.bf16.mxu1 %v6094_v6  ;;  %v6102_v14 = vld [vmem:[%s7015_s21 + $0xe0] sm:$0xff]   ;;  %v6106_v18 = vld [vmem:[%s7015_s21 + $0xd8] sm:$0xff]   ;;  %v6110_v22 = vld [vmem:[%s7015_s21 + $0xd0] sm:$0xff]   ;;  %v7069_v42 = vsub.s32 %v312_v39, %v314_v34 }
  0x85   : > { %v6103_v15 = vld [vmem:[%s7015_s21 + $0x20] sm:$0xff]   ;;  %v6107_v19 = vld [vmem:[%s7015_s21 + $0x18] sm:$0xff]   ;;  %v6111_v23 = vld [vmem:[%s7015_s21 + $0x10] sm:$0xff]   ;;  %p5386_p13 = scmp.ne.s32.totalorder %s7608_s7, 1 }
  0x86   : > { %5397 = vmatpush3.bf16.msra.mxu0 %v6095_v7  ;;  %v6104_v16 = vld [vmem:[%s7015_s21 + $0xa0] sm:$0xff]   ;;  %v6108_v20 = vld [vmem:[%s7015_s21 + $0x98] sm:$0xff]   ;;  %v6112_v24 = vld [vmem:[%s7015_s21 + $0x90] sm:$0xff]  }
  0x87   : > { %5419 = vmatpush3.bf16.msra.mxu1 %v6096_v8  ;;  %5398 = vmatprep.subr.bf16.mxu0 %v6097_v9  ;;  %v6113_v25 = vld [vmem:[%s7015_s21 + $0x48] sm:$0xff]   ;;  %v6117_v30 = vld [vmem:[%s7015_s21 + $0x40] sm:$0xff]   ;;  %v6122_v36 = vld [vmem:[%s7015_s21 + $0x178] sm:$0xff]  }
  0x88   : > { %5420 = vmatprep.subr.bf16.mxu1 %v6098_v10  ;;  %v6114_v26 = vld [vmem:[%s7015_s21 + $0xc8] sm:$0xff]   ;;  %v6118_v31 = vld [vmem:[%s7015_s21 + $0xc0] sm:$0xff]   ;;  %v6124_v41 = vld [vmem:[%s7015_s21 + $0x1f8] sm:$0xff]  }
  0x89   : > { %v6115_v27 = vld [vmem:[%s7015_s21 + $0x8] sm:$0xff]   ;;  %v6119_v32 = vld [vmem:[%s7015_s21] sm:$0xff]   ;;  %v6123_v47 = vld [vmem:[%s7015_s21 + $0x138] sm:$0xff]  }
  0x8a   : > { %5399 = vmatpush3.bf16.msra.mxu0 %v6099_v11  ;;  %v6116_v28 = vld [vmem:[%s7015_s21 + $0x88] sm:$0xff]   ;;  %v6120_v33 = vld [vmem:[%s7015_s21 + $0x80] sm:$0xff]   ;;  %v6125_v50 = vld [vmem:[%s7015_s21 + $0x1b8] sm:$0xff]  }
  0x8b   : > { %5421 = vmatpush3.bf16.msra.mxu1 %v6100_v12  ;;  %5400 = vmatprep.subr.bf16.mxu0 %v6101_v13  ;;  %v283_v35 = vld [vmem:[%s7007_s0] sm:$0xff]  ;;  %v6126_v53 = vld [vmem:[%s7015_s21 + $0x170] sm:$0xff]   ;;  %v6130_v57 = vld [vmem:[%s7015_s21 + $0x168] sm:$0xff]  }
  0x8c   : > { %5422 = vmatprep.subr.bf16.mxu1 %v6102_v14  ;;  %v309_v40 = vcombine.high %v283_v35, %v283_v35  ;;  %v316_v43 = vrot.slane %v283_v35, %v7069_v42  ;;  %v6128_v54 = vld [vmem:[%s7015_s21 + $0x1f0] sm:$0xff]   ;;  %v6132_v58 = vld [vmem:[%s7015_s21 + $0x1e8] sm:$0xff]   ;;  %v6134_v61 = vld [vmem:[%s7015_s21 + $0x160] sm:$0xff]  }
  0x8d   : > { %v6127_v55 = vld [vmem:[%s7015_s21 + $0x130] sm:$0xff]   ;;  %v6131_v59 = vld [vmem:[%s7015_s21 + $0x128] sm:$0xff]   ;;  %v6136_v62 = vld [vmem:[%s7015_s21 + $0x1e0] sm:$0xff]  }
  0x8e   : > { %5401 = vmatpush3.bf16.msra.mxu0 %v6103_v15  ;;  %v323_v44 = vrot.slane %v309_v40, %v7069_v42  ;;  %v324_v45 = vcombine.high %v316_v43, %v316_v43  ;;  %v571_v48 = vpack.c.bf16 %v316_v43, %v316_v43  ;;  %v6129_v56 = vld [vmem:[%s7015_s21 + $0x1b0] sm:$0xff]   ;;  %v6133_v60 = vld [vmem:[%s7015_s21 + $0x1a8] sm:$0xff]   ;;  %v6135_v63 = vld [vmem:[%s7015_s21 + $0x120] sm:$0xff]  }
  0x8f   : > { %5423 = vmatpush3.bf16.msra.mxu1 %v6104_v16  ;;  %5402 = vmatprep.subr.bf16.mxu0 %v6105_v17  ;;  %v6137_v0 = vld [vmem:[%s7015_s21 + $0x1a0] sm:$0xff]   ;;  %v6138_v1 = vld [vmem:[%s7015_s21 + $0x158] sm:$0xff]   ;;  %v6142_v5 = vld [vmem:[%s7015_s21 + $0x150] sm:$0xff]  }
  0x90   : > { %5424 = vmatprep.subr.bf16.mxu1 %v6106_v18  ;;  %v325_v46 = vcombine.high %v323_v44, %v323_v44  ;;  %v573_v49 = vpack.c.bf16 %v323_v44, %v323_v44  ;;  %v572_v51 = vpack.c.bf16 %v324_v45, %v324_v45  ;;  %v6140_v2 = vld [vmem:[%s7015_s21 + $0x1d8] sm:$0xff]   ;;  %v6144_v6 = vld [vmem:[%s7015_s21 + $0x1d0] sm:$0xff]   ;;  %v6146_v9 = vld [vmem:[%s7015_s21 + $0x148] sm:$0xff]  }
  0x91   : > { %v6139_v3 = vld [vmem:[%s7015_s21 + $0x118] sm:$0xff]   ;;  %v6143_v7 = vld [vmem:[%s7015_s21 + $0x110] sm:$0xff]   ;;  %v284_v10 = vld [vmem:[%s7007_s0 + $0x8] sm:$0xff] }
  0x92   : > { %5403 = vmatpush3.bf16.msra.mxu0 %v6107_v19  ;;  %v574_v52 = vpack.c.bf16 %v325_v46, %v325_v46  ;;  %3853 = vmatprep.mubr.bf16.mxu0 %v572_v51  ;;  %v6141_v4 = vld [vmem:[%s7015_s21 + $0x198] sm:$0xff]   ;;  %v6145_v8 = vld [vmem:[%s7015_s21 + $0x190] sm:$0xff]   ;;  %v6148_v11 = vld [vmem:[%s7015_s21 + $0x1c8] sm:$0xff]   ;;  %v333_v12 = vrot.slane %v284_v10, %v7069_v42  ;;  %v326_v13 = vcombine.high %v284_v10, %v284_v10 }
  0x93   : > { %5425 = vmatpush3.bf16.msra.mxu1 %v6108_v20  ;;  %5404 = vmatprep.subr.bf16.mxu0 %v6109_v21  ;;  %v6147_v14 = vld [vmem:[%s7015_s21 + $0x108] sm:$0xff]   ;;  %v6150_v18 = vld [vmem:[%s7015_s21 + $0x140] sm:$0xff]   ;;  %v6162_v34 = vld [vmem:[%s7015_s21 + $0x2b0] sm:$0xff]  }
  0x94   : > { %5426 = vmatprep.subr.bf16.mxu1 %v6110_v22  ;;  %3893 = vmatprep.mubr.bf16.mxu1 %v574_v52  ;;  %v6149_v15 = vld [vmem:[%s7015_s21 + $0x188] sm:$0xff]   ;;  %v341_v16 = vcombine.high %v333_v12, %v333_v12  ;;  %v340_v17 = vrot.slane %v326_v13, %v7069_v42  ;;  %v6152_v19 = vld [vmem:[%s7015_s21 + $0x1c0] sm:$0xff]   ;;  %v6171_v44 = vld [vmem:[%s7015_s21 + $0x258] sm:$0xff]  }
  0x95   : > { %v6151_v22 = vld [vmem:[%s7015_s21 + $0x100] sm:$0xff]   ;;  %v6163_v35 = vld [vmem:[%s7015_s21 + $0x268] sm:$0xff]   ;;  %v6173_v45 = vld [vmem:[%s7015_s21 + $0x2d8] sm:$0xff]  }
  0x96   : > { %5405 = vmatpush3.bf16.msra.mxu0 %v6111_v23  ;;  %v576_v20 = vpack.c.bf16 %v341_v16, %v341_v16  ;;  %v342_v21 = vcombine.high %v340_v17, %v340_v17  ;;  %v6153_v23 = vld [vmem:[%s7015_s21 + $0x180] sm:$0xff]   ;;  %v577_v29 = vpack.c.bf16 %v340_v17, %v340_v17  ;;  %v6164_v37 = vld [vmem:[%s7015_s21 + $0x228] sm:$0xff]   ;;  %v6172_v46 = vld [vmem:[%s7015_s21 + $0x218] sm:$0xff]  }
  0x97   : > { %5427 = vmatpush3.bf16.msra.mxu1 %v6112_v24  ;;  %5406 = vmatprep.subr.bf16.mxu0 %v6113_v25  ;;  %v6154_v25 = vld [vmem:[%s7015_s21 + $0x278] sm:$0xff]   ;;  %v6166_v38 = vld [vmem:[%s7015_s21 + $0x2a8] sm:$0xff]   ;;  %v6167_v39 = vld [vmem:[%s7015_s21 + $0x260] sm:$0xff]  }
  0x98   : > { %5428 = vmatprep.subr.bf16.mxu1 %v6114_v26  ;;  %v578_v24 = vpack.c.bf16 %v342_v21, %v342_v21  ;;  %v6157_v26 = vld [vmem:[%s7015_s21 + $0x2f8] sm:$0xff]   ;;  %v6169_v40 = vld [vmem:[%s7015_s21 + $0x2e0] sm:$0xff]   ;;  %v6178_v51 = vld [vmem:[%s7015_s21 + $0x290] sm:$0xff]  }
  0x99   : > { %v6170_v43 = vld [vmem:[%s7015_s21 + $0x2a0] sm:$0xff]   ;;  %v6179_v52 = vld [vmem:[%s7015_s21 + $0x248] sm:$0xff]   ;;  %v6192_v10 = vld [vmem:[%s7015_s21 + $0x370] sm:$0xff]  }
  0x9a   : > { %5407 = vmatpush3.bf16.msra.mxu0 %v6115_v27  ;;  %v6156_v27 = vld [vmem:[%s7015_s21 + $0x238] sm:$0xff]   ;;  %v6195_v13 = vld [vmem:[%s7015_s21 + $0x3b0] sm:$0xff]   ;;  %v6197_v16 = vld [vmem:[%s7015_s21 + $0x328] sm:$0xff]  }
  0x9b   : > { %5429 = vmatpush3.bf16.msra.mxu1 %v6116_v28  ;;  %5408 = vmatprep.subr.bf16.mxu0 %v6117_v30  ;;  %v575_v28 = vpack.c.bf16 %v333_v12, %v333_v12  ;;  %v6158_v30 = vld [vmem:[%s7015_s21 + $0x2b8] sm:$0xff]   ;;  %v6193_v12 = vld [vmem:[%s7015_s21 + $0x330] sm:$0xff]   ;;  %v6199_v17 = vld [vmem:[%s7015_s21 + $0x3a8] sm:$0xff]  }
  0x9c   : > { %5430 = vmatprep.subr.bf16.mxu1 %v6118_v31  ;;  %v6159_v31 = vld [vmem:[%s7015_s21 + $0x270] sm:$0xff]   ;;  %v6203_v21 = vld [vmem:[%s7015_s21 + $0x3a0] sm:$0xff]  }
  0x9e   : > { %5409 = vmatpush3.bf16.msra.mxu0 %v6119_v32  ;;  %v6161_v32 = vld [vmem:[%s7015_s21 + $0x2f0] sm:$0xff]  }
  0x9f   : > { %5431 = vmatpush3.bf16.msra.mxu1 %v6120_v33  ;;  %5438 = vmatprep.subr.bf16.mxu0 %v6122_v36  ;;  %v6160_v33 = vld [vmem:[%s7015_s21 + $0x230] sm:$0xff]   ;;  %v6165_v36 = vld [vmem:[%s7015_s21 + $0x2e8] sm:$0xff]  }
  0xa0   : > { %5460 = vmatprep.subr.bf16.mxu1 %v6124_v41  ;;  %v6168_v41 = vld [vmem:[%s7015_s21 + $0x220] sm:$0xff]  }
  0xa1   : > { %3854 = vmatmul.mubr.bf16.vlgmr.msra.gmra.mxu0 %v571_v48  ;;  %v6175_v48 = vld [vmem:[%s7015_s21 + $0x250] sm:$0xff]  }
  0xa2   : > { %3894 = vmatmul.mubr.bf16.vlgmr.msra.gmra.mxu1 %v573_v49  ;;  %5439 = vmatpush3.bf16.msra.mxu0 %v6123_v47  ;;  %v6174_v47 = vld [vmem:[%s7015_s21 + $0x298] sm:$0xff]   ;;  %v6177_v49 = vld [vmem:[%s7015_s21 + $0x2d0] sm:$0xff]  }
  0xa3   : > { %5461 = vmatpush3.bf16.msra.mxu1 %v6125_v50  ;;  %5440 = vmatprep.subr.bf16.mxu0 %v6126_v53  ;;  %v6176_v50 = vld [vmem:[%s7015_s21 + $0x210] sm:$0xff]  }
  0xa4   : > { %5462 = vmatprep.subr.bf16.mxu1 %v6128_v54  ;;  %3933 = vmatprep.mubr.bf16.mxu0 %v576_v20  ;;  %v285_v53 = vld [vmem:[%s7007_s0 + $0x10] sm:$0xff]  ;;  %v6201_v20 = vld [vmem:[%s7015_s21 + $0x320] sm:$0xff]  }
  0xa5   : > { %3973 = vmatprep.mubr.bf16.mxu1 %v578_v24  ;;  %v6181_v54 = vld [vmem:[%s7015_s21 + $0x2c8] sm:$0xff]   ;;  %v6205_v24 = vld [vmem:[%s7015_s21 + $0x318] sm:$0xff]  }
  0xa6   : > { %5441 = vmatpush3.bf16.msra.mxu0 %v6127_v55  ;;  %v350_v55 = vrot.slane %v285_v53, %v7069_v42 }
  0xa7   : > { %5463 = vmatpush3.bf16.msra.mxu1 %v6129_v56  ;;  %5442 = vmatprep.subr.bf16.mxu0 %v6130_v57  ;;  %v343_v56 = vcombine.high %v285_v53, %v285_v53  ;;  %v6180_v57 = vld [vmem:[%s7015_s21 + $0x208] sm:$0xff]   ;;  %v6225_v53 = vld [vmem:[%s7015_s21 + $0x470] sm:$0xff]  }
  0xa8   : > { %5464 = vmatprep.subr.bf16.mxu1 %v6132_v58  ;;  %v6182_v58 = vld [vmem:[%s7015_s21 + $0x288] sm:$0xff]  }
  0xaa   : > { %5443 = vmatpush3.bf16.msra.mxu0 %v6131_v59  ;;  %v358_v59 = vcombine.high %v350_v55, %v350_v55 }
  0xab   : > { %5465 = vmatpush3.bf16.msra.mxu1 %v6133_v60  ;;  %5444 = vmatprep.subr.bf16.mxu0 %v6134_v61  ;;  %v357_v60 = vrot.slane %v343_v56, %v7069_v42  ;;  %v6183_v61 = vld [vmem:[%s7015_s21 + $0x240] sm:$0xff]   ;;  %v6228_v56 = vld [vmem:[%s7015_s21 + $0x4b0] sm:$0xff]  }
  0xac   : > { %5466 = vmatprep.subr.bf16.mxu1 %v6136_v62  ;;  %v6185_v62 = vld [vmem:[%s7015_s21 + $0x2c0] sm:$0xff]  }
  0xae   : > { %5445 = vmatpush3.bf16.msra.mxu0 %v6135_v63  ;;  %v580_v63 = vpack.c.bf16 %v358_v59, %v358_v59  ;;  %v6230_v59 = vld [vmem:[%s7015_s21 + $0x428] sm:$0xff]  }
  0xaf   : > { %5467 = vmatpush3.bf16.msra.mxu1 %v6137_v0  ;;  %5446 = vmatprep.subr.bf16.mxu0 %v6138_v1  ;;  %v359_v0 = vcombine.high %v357_v60, %v357_v60  ;;  %v6184_v1 = vld [vmem:[%s7015_s21 + $0x200] sm:$0xff]  }
  0xb0   : > { %5468 = vmatprep.subr.bf16.mxu1 %v6140_v2  ;;  %v6186_v2 = vld [vmem:[%s7015_s21 + $0x280] sm:$0xff]  }
  0xb2   : > { %5447 = vmatpush3.bf16.msra.mxu0 %v6139_v3  ;;  %v582_v3 = vpack.c.bf16 %v359_v0, %v359_v0  ;;  %v6236_v0 = vld [vmem:[%s7015_s21 + $0x4a0] sm:$0xff]  }
  0xb3   : > { %5469 = vmatpush3.bf16.msra.mxu1 %v6141_v4  ;;  %5448 = vmatprep.subr.bf16.mxu0 %v6142_v5  ;;  %v6187_v4 = vld [vmem:[%s7015_s21 + $0x378] sm:$0xff]  }
  0xb4   : > { %5470 = vmatprep.subr.bf16.mxu1 %v6144_v6  ;;  %v6190_v5 = vld [vmem:[%s7015_s21 + $0x3f8] sm:$0xff]  }
  0xb5   : > { %v6189_v6 = vld [vmem:[%s7015_s21 + $0x338] sm:$0xff]  }
  0xb6   : > { %5449 = vmatpush3.bf16.msra.mxu0 %v6143_v7  ;;  %v579_v7 = vpack.c.bf16 %v350_v55, %v350_v55  ;;  %v6226_v55 = vld [vmem:[%s7015_s21 + $0x430] sm:$0xff]  }
  0xb7   : > { %5471 = vmatpush3.bf16.msra.mxu1 %v6145_v8  ;;  %5450 = vmatprep.subr.bf16.mxu0 %v6146_v9  ;;  %v581_v8 = vpack.c.bf16 %v357_v60, %v357_v60  ;;  %v6191_v9 = vld [vmem:[%s7015_s21 + $0x3b8] sm:$0xff]   ;;  %v6232_v60 = vld [vmem:[%s7015_s21 + $0x4a8] sm:$0xff]  }
  0xb8   : > { %5472 = vmatprep.subr.bf16.mxu1 %v6148_v11  ;;  %v6194_v11 = vld [vmem:[%s7015_s21 + $0x3f0] sm:$0xff]  }
  0xba   : > { %5451 = vmatpush3.bf16.msra.mxu0 %v6147_v14  ;;  %v6196_v14 = vld [vmem:[%s7015_s21 + $0x368] sm:$0xff]  }
  0xbb   : > { %5473 = vmatpush3.bf16.msra.mxu1 %v6149_v15  ;;  %5452 = vmatprep.subr.bf16.mxu0 %v6150_v18  ;;  %v6198_v15 = vld [vmem:[%s7015_s21 + $0x3e8] sm:$0xff]   ;;  %v6200_v18 = vld [vmem:[%s7015_s21 + $0x360] sm:$0xff]  }
  0xbc   : > { %5474 = vmatprep.subr.bf16.mxu1 %v6152_v19  ;;  %v6202_v19 = vld [vmem:[%s7015_s21 + $0x3e0] sm:$0xff]  }
  0xbe   : > { %5453 = vmatpush3.bf16.msra.mxu0 %v6151_v22  ;;  %v6204_v22 = vld [vmem:[%s7015_s21 + $0x358] sm:$0xff]  }
  0xbf   : > { %5475 = vmatpush3.bf16.msra.mxu1 %v6153_v23  ;;  %5482 = vmatprep.subr.bf16.mxu0 %v6154_v25  ;;  %v6206_v23 = vld [vmem:[%s7015_s21 + $0x3d8] sm:$0xff]  }
  0xc0   : > { %5504 = vmatprep.subr.bf16.mxu1 %v6157_v26  ;;  %v6207_v25 = vld [vmem:[%s7015_s21 + $0x398] sm:$0xff]   ;;  %v6208_v26 = vld [vmem:[%s7015_s21 + $0x350] sm:$0xff]  }
  0xc1   : > { %3934 = vmatmul.mubr.bf16.vlgmr.msra.gmra.mxu0 %v575_v28  ;;  %v6209_v28 = vld [vmem:[%s7015_s21 + $0x310] sm:$0xff]  }
  0xc2   : > { %3974 = vmatmul.mubr.bf16.vlgmr.msra.gmra.mxu1 %v577_v29  ;;  %5483 = vmatpush3.bf16.msra.mxu0 %v6156_v27  ;;  %v6210_v27 = vld [vmem:[%s7015_s21 + $0x3d0] sm:$0xff]  }
  0xc3   : > { %5505 = vmatpush3.bf16.msra.mxu1 %v6158_v30  ;;  %5484 = vmatprep.subr.bf16.mxu0 %v6159_v31  ;;  %v6211_v29 = vld [vmem:[%s7015_s21 + $0x390] sm:$0xff]   ;;  %v6212_v30 = vld [vmem:[%s7015_s21 + $0x348] sm:$0xff]  }
  0xc4   : > { %5506 = vmatprep.subr.bf16.mxu1 %v6161_v32  ;;  %4013 = vmatprep.mubr.bf16.mxu0 %v580_v63  ;;  %v6214_v31 = vld [vmem:[%s7015_s21 + $0x3c8] sm:$0xff]   ;;  %v286_v32 = vld [vmem:[%s7007_s0 + $0x18] sm:$0xff]  ;;  %v6234_v63 = vld [vmem:[%s7015_s21 + $0x420] sm:$0xff]  }
  0xc5   : > { %4053 = vmatprep.mubr.bf16.mxu1 %v582_v3  ;;  %v6238_v3 = vld [vmem:[%s7015_s21 + $0x418] sm:$0xff]  }
  0xc6   : > { %5485 = vmatpush3.bf16.msra.mxu0 %v6160_v33  ;;  %v6213_v33 = vld [vmem:[%s7015_s21 + $0x308] sm:$0xff]  }
  0xc7   : > { %5507 = vmatpush3.bf16.msra.mxu1 %v6162_v34  ;;  %5486 = vmatprep.subr.bf16.mxu0 %v6163_v35  ;;  %v367_v34 = vrot.slane %v286_v32, %v7069_v42  ;;  %v360_v35 = vcombine.high %v286_v32, %v286_v32  ;;  %v6260_v32 = vld [vmem:[%s7015_s21 + $0x5f0] sm:$0xff]  }
  0xc8   : > { %5508 = vmatprep.subr.bf16.mxu1 %v6165_v36  ;;  %v6215_v36 = vld [vmem:[%s7015_s21 + $0x388] sm:$0xff]  }
  0xca   : > { %5487 = vmatpush3.bf16.msra.mxu0 %v6164_v37  ;;  %v6216_v37 = vld [vmem:[%s7015_s21 + $0x340] sm:$0xff]  }
  0xcb   : > { %5509 = vmatpush3.bf16.msra.mxu1 %v6166_v38  ;;  %5488 = vmatprep.subr.bf16.mxu0 %v6167_v39  ;;  %v375_v38 = vcombine.high %v367_v34, %v367_v34  ;;  %v374_v39 = vrot.slane %v360_v35, %v7069_v42  ;;  %v6262_v35 = vld [vmem:[%s7015_s21 + $0x568] sm:$0xff]  }
  0xcc   : > { %5510 = vmatprep.subr.bf16.mxu1 %v6169_v40  ;;  %v6218_v40 = vld [vmem:[%s7015_s21 + $0x3c0] sm:$0xff]  }
  0xce   : > { %5489 = vmatpush3.bf16.msra.mxu0 %v6168_v41  ;;  %v6217_v41 = vld [vmem:[%s7015_s21 + $0x300] sm:$0xff]  }
  0xcf   : > { %5511 = vmatpush3.bf16.msra.mxu1 %v6170_v43  ;;  %5490 = vmatprep.subr.bf16.mxu0 %v6171_v44  ;;  %v584_v43 = vpack.c.bf16 %v375_v38, %v375_v38  ;;  %v376_v44 = vcombine.high %v374_v39, %v374_v39  ;;  %v6265_v38 = vld [vmem:[%s7015_s21 + $0x5a8] sm:$0xff]  }
  0xd0   : > { %5512 = vmatprep.subr.bf16.mxu1 %v6173_v45  ;;  %v6219_v45 = vld [vmem:[%s7015_s21 + $0x380] sm:$0xff]  }
  0xd2   : > { %5491 = vmatpush3.bf16.msra.mxu0 %v6172_v46  ;;  %v6220_v46 = vld [vmem:[%s7015_s21 + $0x478] sm:$0xff]  }
  0xd3   : > { %5513 = vmatpush3.bf16.msra.mxu1 %v6174_v47  ;;  %5492 = vmatprep.subr.bf16.mxu0 %v6175_v48  ;;  %v586_v47 = vpack.c.bf16 %v376_v44, %v376_v44  ;;  %v6223_v48 = vld [vmem:[%s7015_s21 + $0x4f8] sm:$0xff]  }
  0xd4   : > { %5514 = vmatprep.subr.bf16.mxu1 %v6177_v49  ;;  %v6222_v49 = vld [vmem:[%s7015_s21 + $0x438] sm:$0xff]  }
  0xd5   : > { %v6270_v44 = vld [vmem:[%s7015_s21 + $0x558] sm:$0xff]  }
  0xd6   : > { %5493 = vmatpush3.bf16.msra.mxu0 %v6176_v50  ;;  %v583_v50 = vpack.c.bf16 %v367_v34, %v367_v34  ;;  %v6261_v34 = vld [vmem:[%s7015_s21 + $0x5b0] sm:$0xff]  }
  0xd7   : > { %5515 = vmatpush3.bf16.msra.mxu1 %v6178_v51  ;;  %5494 = vmatprep.subr.bf16.mxu0 %v6179_v52  ;;  %v585_v51 = vpack.c.bf16 %v374_v39, %v374_v39  ;;  %v6224_v52 = vld [vmem:[%s7015_s21 + $0x4b8] sm:$0xff]   ;;  %v6266_v39 = vld [vmem:[%s7015_s21 + $0x560] sm:$0xff]  }
  0xd8   : > { %5516 = vmatprep.subr.bf16.mxu1 %v6181_v54  ;;  %v6227_v54 = vld [vmem:[%s7015_s21 + $0x4f0] sm:$0xff]  }
  0xda   : > { %5495 = vmatpush3.bf16.msra.mxu0 %v6180_v57  ;;  %v6229_v57 = vld [vmem:[%s7015_s21 + $0x468] sm:$0xff]  }
  0xdb   : > { %5517 = vmatpush3.bf16.msra.mxu1 %v6182_v58  ;;  %5496 = vmatprep.subr.bf16.mxu0 %v6183_v61  ;;  %v6231_v58 = vld [vmem:[%s7015_s21 + $0x4e8] sm:$0xff]   ;;  %v6233_v61 = vld [vmem:[%s7015_s21 + $0x460] sm:$0xff]  }
  0xdc   : > { %5518 = vmatprep.subr.bf16.mxu1 %v6185_v62  ;;  %v6235_v62 = vld [vmem:[%s7015_s21 + $0x4e0] sm:$0xff]  }
  0xde   : > { %5497 = vmatpush3.bf16.msra.mxu0 %v6184_v1  ;;  %v6237_v1 = vld [vmem:[%s7015_s21 + $0x458] sm:$0xff]  }
  0xdf   : > { %5519 = vmatpush3.bf16.msra.mxu1 %v6186_v2  ;;  %5526 = vmatprep.subr.bf16.mxu0 %v6187_v4  ;;  %v6239_v2 = vld [vmem:[%s7015_s21 + $0x4d8] sm:$0xff]  }
  0xe0   : > { %5548 = vmatprep.subr.bf16.mxu1 %v6190_v5  ;;  %v6240_v4 = vld [vmem:[%s7015_s21 + $0x498] sm:$0xff]   ;;  %v6241_v5 = vld [vmem:[%s7015_s21 + $0x450] sm:$0xff]  }
  0xe1   : > { %4014 = vmatmul.mubr.bf16.vlgmr.msra.gmra.mxu0 %v579_v7  ;;  %v6242_v7 = vld [vmem:[%s7015_s21 + $0x410] sm:$0xff]  }
  0xe2   : > { %4054 = vmatmul.mubr.bf16.vlgmr.msra.gmra.mxu1 %v581_v8  ;;  %5527 = vmatpush3.bf16.msra.mxu0 %v6189_v6  ;;  %v6243_v6 = vld [vmem:[%s7015_s21 + $0x4d0] sm:$0xff]  }
  0xe3   : > { %5549 = vmatpush3.bf16.msra.mxu1 %v6191_v9  ;;  %5528 = vmatprep.subr.bf16.mxu0 %v6192_v10  ;;  %v6244_v8 = vld [vmem:[%s7015_s21 + $0x490] sm:$0xff]   ;;  %v6245_v9 = vld [vmem:[%s7015_s21 + $0x448] sm:$0xff]  }
  0xe4   : > { %5550 = vmatprep.subr.bf16.mxu1 %v6194_v11  ;;  %4093 = vmatprep.mubr.bf16.mxu0 %v584_v43  ;;  %v6247_v10 = vld [vmem:[%s7015_s21 + $0x4c8] sm:$0xff]   ;;  %v287_v11 = vld [vmem:[%s7007_s0 + $0x20] sm:$0xff] }
  0xe5   : > { %4133 = vmatprep.mubr.bf16.mxu1 %v586_v47  ;;  %v6269_v43 = vld [vmem:[%s7015_s21 + $0x5a0] sm:$0xff]   ;;  %v6273_v47 = vld [vmem:[%s7015_s21 + $0x598] sm:$0xff]  }
  0xe6   : > { %5529 = vmatpush3.bf16.msra.mxu0 %v6193_v12  ;;  %v6246_v12 = vld [vmem:[%s7015_s21 + $0x408] sm:$0xff]  }
  0xe7   : > { %5551 = vmatpush3.bf16.msra.mxu1 %v6195_v13  ;;  %5530 = vmatprep.subr.bf16.mxu0 %v6196_v14  ;;  %v384_v13 = vrot.slane %v287_v11, %v7069_v42  ;;  %v377_v14 = vcombine.high %v287_v11, %v287_v11  ;;  %v6293_v11 = vld [vmem:[%s7015_s21 + $0x6f0] sm:$0xff]  }
  0xe8   : > { %5552 = vmatprep.subr.bf16.mxu1 %v6198_v15  ;;  %v6248_v15 = vld [vmem:[%s7015_s21 + $0x488] sm:$0xff]  }
  0xea   : > { %5531 = vmatpush3.bf16.msra.mxu0 %v6197_v16  ;;  %v6249_v16 = vld [vmem:[%s7015_s21 + $0x440] sm:$0xff]  }
  0xeb   : > { %5553 = vmatpush3.bf16.msra.mxu1 %v6199_v17  ;;  %5532 = vmatprep.subr.bf16.mxu0 %v6200_v18  ;;  %v392_v17 = vcombine.high %v384_v13, %v384_v13  ;;  %v391_v18 = vrot.slane %v377_v14, %v7069_v42  ;;  %v6295_v14 = vld [vmem:[%s7015_s21 + $0x668] sm:$0xff]  }
  0xec   : > { %5554 = vmatprep.subr.bf16.mxu1 %v6202_v19  ;;  %v6251_v19 = vld [vmem:[%s7015_s21 + $0x4c0] sm:$0xff]  }
  0xee   : > { %5533 = vmatpush3.bf16.msra.mxu0 %v6201_v20  ;;  %v6250_v20 = vld [vmem:[%s7015_s21 + $0x400] sm:$0xff]  }
  0xef   : > { %5555 = vmatpush3.bf16.msra.mxu1 %v6203_v21  ;;  %5534 = vmatprep.subr.bf16.mxu0 %v6204_v22  ;;  %v588_v21 = vpack.c.bf16 %v392_v17, %v392_v17  ;;  %v393_v22 = vcombine.high %v391_v18, %v391_v18  ;;  %v6298_v17 = vld [vmem:[%s7015_s21 + $0x6a8] sm:$0xff]  }
  0xf0   : > { %5556 = vmatprep.subr.bf16.mxu1 %v6206_v23  ;;  %v6252_v23 = vld [vmem:[%s7015_s21 + $0x480] sm:$0xff]  }
  0xf2   : > { %5535 = vmatpush3.bf16.msra.mxu0 %v6205_v24  ;;  %v6253_v24 = vld [vmem:[%s7015_s21 + $0x578] sm:$0xff]  }
  0xf3   : > { %5557 = vmatpush3.bf16.msra.mxu1 %v6207_v25  ;;  %5536 = vmatprep.subr.bf16.mxu0 %v6208_v26  ;;  %v590_v25 = vpack.c.bf16 %v393_v22, %v393_v22  ;;  %v6256_v26 = vld [vmem:[%s7015_s21 + $0x5f8] sm:$0xff]  }
  0xf4   : > { %5558 = vmatprep.subr.bf16.mxu1 %v6210_v27  ;;  %v6255_v27 = vld [vmem:[%s7015_s21 + $0x538] sm:$0xff]  }
  0xf5   : > { %v6303_v22 = vld [vmem:[%s7015_s21 + $0x658] sm:$0xff]  }
  0xf6   : > { %5537 = vmatpush3.bf16.msra.mxu0 %v6209_v28  ;;  %v587_v28 = vpack.c.bf16 %v384_v13, %v384_v13  ;;  %v6294_v13 = vld [vmem:[%s7015_s21 + $0x6b0] sm:$0xff]  }
  0xf7   : > { %5559 = vmatpush3.bf16.msra.mxu1 %v6211_v29  ;;  %5538 = vmatprep.subr.bf16.mxu0 %v6212_v30  ;;  %v589_v29 = vpack.c.bf16 %v391_v18, %v391_v18  ;;  %v6257_v30 = vld [vmem:[%s7015_s21 + $0x5b8] sm:$0xff]   ;;  %v6299_v18 = vld [vmem:[%s7015_s21 + $0x660] sm:$0xff]  }
  0xf8   : > { %5560 = vmatprep.subr.bf16.mxu1 %v6214_v31  ;;  %v6258_v31 = vld [vmem:[%s7015_s21 + $0x570] sm:$0xff]  }
  0xfa   : > { %5539 = vmatpush3.bf16.msra.mxu0 %v6213_v33  ;;  %v6259_v33 = vld [vmem:[%s7015_s21 + $0x530] sm:$0xff]  }
  0xfb   : > { %5561 = vmatpush3.bf16.msra.mxu1 %v6215_v36  ;;  %5540 = vmatprep.subr.bf16.mxu0 %v6216_v37  ;;  %v6264_v36 = vld [vmem:[%s7015_s21 + $0x5e8] sm:$0xff]  }
  0xfc   : > { %5562 = vmatprep.subr.bf16.mxu1 %v6218_v40  ;;  %v6263_v37 = vld [vmem:[%s7015_s21 + $0x528] sm:$0xff]   ;;  %v6268_v40 = vld [vmem:[%s7015_s21 + $0x5e0] sm:$0xff]  }
  0xfe   : > { %5541 = vmatpush3.bf16.msra.mxu0 %v6217_v41  ;;  %v6267_v41 = vld [vmem:[%s7015_s21 + $0x520] sm:$0xff]  }
  0xff   : > { %5563 = vmatpush3.bf16.msra.mxu1 %v6219_v45  ;;  %5570 = vmatprep.subr.bf16.mxu0 %v6220_v46  ;;  %v6272_v45 = vld [vmem:[%s7015_s21 + $0x5d8] sm:$0xff]  }
 0x100   : > { %5592 = vmatprep.subr.bf16.mxu1 %v6223_v48  ;;  %v6271_v46 = vld [vmem:[%s7015_s21 + $0x518] sm:$0xff]   ;;  %v6274_v48 = vld [vmem:[%s7015_s21 + $0x550] sm:$0xff]  }
 0x101   : > { %4094 = vmatmul.mubr.bf16.vlgmr.msra.gmra.mxu0 %v583_v50  ;;  %v6275_v50 = vld [vmem:[%s7015_s21 + $0x510] sm:$0xff]  }
 0x102   : > { %4134 = vmatmul.mubr.bf16.vlgmr.msra.gmra.mxu1 %v585_v51  ;;  %5571 = vmatpush3.bf16.msra.mxu0 %v6222_v49  ;;  %v6276_v49 = vld [vmem:[%s7015_s21 + $0x5d0] sm:$0xff]  }
 0x103   : > { %5593 = vmatpush3.bf16.msra.mxu1 %v6224_v52  ;;  %5572 = vmatprep.subr.bf16.mxu0 %v6225_v53  ;;  %v6277_v51 = vld [vmem:[%s7015_s21 + $0x590] sm:$0xff]   ;;  %v6278_v52 = vld [vmem:[%s7015_s21 + $0x548] sm:$0xff]  }
 0x104   : > { %5594 = vmatprep.subr.bf16.mxu1 %v6227_v54  ;;  %4173 = vmatprep.mubr.bf16.mxu0 %v588_v21  ;;  %v6280_v53 = vld [vmem:[%s7015_s21 + $0x5c8] sm:$0xff]   ;;  %v6302_v21 = vld [vmem:[%s7015_s21 + $0x6a0] sm:$0xff]  }
 0x105   : > { %4213 = vmatprep.mubr.bf16.mxu1 %v590_v25  ;;  %v288_v54 = vld [vmem:[%s7007_s0 + $0x28] sm:$0xff]  ;;  %v6306_v25 = vld [vmem:[%s7015_s21 + $0x698] sm:$0xff]  }
 0x106   : > { %5573 = vmatpush3.bf16.msra.mxu0 %v6226_v55  ;;  %v6279_v55 = vld [vmem:[%s7015_s21 + $0x508] sm:$0xff]  }
 0x107   : > { %5595 = vmatpush3.bf16.msra.mxu1 %v6228_v56  ;;  %5574 = vmatprep.subr.bf16.mxu0 %v6229_v57  ;;  %v401_v56 = vrot.slane %v288_v54, %v7069_v42  ;;  %v394_v57 = vcombine.high %v288_v54, %v288_v54  ;;  %v6326_v54 = vld [vmem:[%s7015_s21 + $0x7f0] sm:$0xff]  }
 0x108   : > { %5596 = vmatprep.subr.bf16.mxu1 %v6231_v58  ;;  %v6281_v58 = vld [vmem:[%s7015_s21 + $0x588] sm:$0xff]  }
 0x10a   : > { %5575 = vmatpush3.bf16.msra.mxu0 %v6230_v59  ;;  %v6282_v59 = vld [vmem:[%s7015_s21 + $0x540] sm:$0xff]  }
 0x10b   : > { %5597 = vmatpush3.bf16.msra.mxu1 %v6232_v60  ;;  %5576 = vmatprep.subr.bf16.mxu0 %v6233_v61  ;;  %v409_v60 = vcombine.high %v401_v56, %v401_v56  ;;  %v408_v61 = vrot.slane %v394_v57, %v7069_v42 }
 0x10c   : > { %5598 = vmatprep.subr.bf16.mxu1 %v6235_v62  ;;  %v6284_v62 = vld [vmem:[%s7015_s21 + $0x5c0] sm:$0xff]  }
 0x10e   : > { %5577 = vmatpush3.bf16.msra.mxu0 %v6234_v63  ;;  %v6283_v63 = vld [vmem:[%s7015_s21 + $0x500] sm:$0xff]  }
 0x10f   : > { %5599 = vmatpush3.bf16.msra.mxu1 %v6236_v0  ;;  %5578 = vmatprep.subr.bf16.mxu0 %v6237_v1  ;;  %v592_v0 = vpack.c.bf16 %v409_v60, %v409_v60  ;;  %v410_v1 = vcombine.high %v408_v61, %v408_v61 }
 0x110   : > { %5600 = vmatprep.subr.bf16.mxu1 %v6239_v2  ;;  %v6285_v2 = vld [vmem:[%s7015_s21 + $0x580] sm:$0xff]  }
 0x112   : > { %5579 = vmatpush3.bf16.msra.mxu0 %v6238_v3  ;;  %v6286_v3 = vld [vmem:[%s7015_s21 + $0x678] sm:$0xff]  }
 0x113   : > { %5601 = vmatpush3.bf16.msra.mxu1 %v6240_v4  ;;  %5580 = vmatprep.subr.bf16.mxu0 %v6241_v5  ;;  %v594_v4 = vpack.c.bf16 %v410_v1, %v410_v1  ;;  %v6289_v5 = vld [vmem:[%s7015_s21 + $0x6f8] sm:$0xff]   ;;  %v6329_v1 = vld [vmem:[%s7015_s21 + $0x728] sm:$0xff]  }
 0x114   : > { %5602 = vmatprep.subr.bf16.mxu1 %v6243_v6  ;;  %v6288_v6 = vld [vmem:[%s7015_s21 + $0x638] sm:$0xff]  }
 0x116   : > { %5581 = vmatpush3.bf16.msra.mxu0 %v6242_v7  ;;  %v591_v7 = vpack.c.bf16 %v401_v56, %v401_v56 }
 0x117   : > { %5603 = vmatpush3.bf16.msra.mxu1 %v6244_v8  ;;  %5582 = vmatprep.subr.bf16.mxu0 %v6245_v9  ;;  %v593_v8 = vpack.c.bf16 %v408_v61, %v408_v61  ;;  %v6290_v9 = vld [vmem:[%s7015_s21 + $0x6b8] sm:$0xff]  }
 0x118   : > { %5604 = vmatprep.subr.bf16.mxu1 %v6247_v10  ;;  %v6291_v10 = vld [vmem:[%s7015_s21 + $0x670] sm:$0xff]  }
 0x11a   : > { %5583 = vmatpush3.bf16.msra.mxu0 %v6246_v12  ;;  %v6292_v12 = vld [vmem:[%s7015_s21 + $0x630] sm:$0xff]  }
 0x11b   : > { %5605 = vmatpush3.bf16.msra.mxu1 %v6248_v15  ;;  %5584 = vmatprep.subr.bf16.mxu0 %v6249_v16  ;;  %v6297_v15 = vld [vmem:[%s7015_s21 + $0x6e8] sm:$0xff]  }
 0x11c   : > { %5606 = vmatprep.subr.bf16.mxu1 %v6251_v19  ;;  %v6296_v16 = vld [vmem:[%s7015_s21 + $0x628] sm:$0xff]   ;;  %v6301_v19 = vld [vmem:[%s7015_s21 + $0x6e0] sm:$0xff]  }
 0x11e   : > { %5585 = vmatpush3.bf16.msra.mxu0 %v6250_v20  ;;  %v6300_v20 = vld [vmem:[%s7015_s21 + $0x620] sm:$0xff]  }
 0x11f   : > { %5607 = vmatpush3.bf16.msra.mxu1 %v6252_v23  ;;  %5614 = vmatprep.subr.bf16.mxu0 %v6253_v24  ;;  %v6305_v23 = vld [vmem:[%s7015_s21 + $0x6d8] sm:$0xff]  }
 0x120   : > { %5636 = vmatprep.subr.bf16.mxu1 %v6256_v26  ;;  %v6304_v24 = vld [vmem:[%s7015_s21 + $0x618] sm:$0xff]   ;;  %v6307_v26 = vld [vmem:[%s7015_s21 + $0x650] sm:$0xff]  }
 0x121   : > { %4174 = vmatmul.mubr.bf16.vlgmr.msra.gmra.mxu0 %v587_v28  ;;  %v6308_v28 = vld [vmem:[%s7015_s21 + $0x610] sm:$0xff]  }
 0x122   : > { %4214 = vmatmul.mubr.bf16.vlgmr.msra.gmra.mxu1 %v589_v29  ;;  %5615 = vmatpush3.bf16.msra.mxu0 %v6255_v27  ;;  %v6309_v27 = vld [vmem:[%s7015_s21 + $0x6d0] sm:$0xff]  }
 0x123   : > { %5637 = vmatpush3.bf16.msra.mxu1 %v6257_v30  ;;  %5616 = vmatprep.subr.bf16.mxu0 %v6258_v31  ;;  %v6310_v29 = vld [vmem:[%s7015_s21 + $0x690] sm:$0xff]   ;;  %v6311_v30 = vld [vmem:[%s7015_s21 + $0x648] sm:$0xff]  }
 0x124   : > { %5638 = vmatprep.subr.bf16.mxu1 %v6260_v32  ;;  %4253 = vmatprep.mubr.bf16.mxu0 %v592_v0  ;;  %v6313_v31 = vld [vmem:[%s7015_s21 + $0x6c8] sm:$0xff]  }
 0x125   : > { %4293 = vmatprep.mubr.bf16.mxu1 %v594_v4  ;;  %v6312_v32 = vld [vmem:[%s7015_s21 + $0x608] sm:$0xff]  }
 0x126   : > { %5617 = vmatpush3.bf16.msra.mxu0 %v6259_v33  ;;  %v289_v33 = vld [vmem:[%s7007_s0 + $0x30] sm:$0xff] }
 0x127   : > { %5639 = vmatpush3.bf16.msra.mxu1 %v6261_v34  ;;  %5618 = vmatprep.subr.bf16.mxu0 %v6262_v35  ;;  %v6314_v34 = vld [vmem:[%s7015_s21 + $0x688] sm:$0xff]   ;;  %v418_v35 = vrot.slane %v289_v33, %v7069_v42 }
 0x128   : > { %5640 = vmatprep.subr.bf16.mxu1 %v6264_v36  ;;  %v411_v36 = vcombine.high %v289_v33, %v289_v33  ;;  %v6351_v33 = vld [vmem:[%s7015_s21 + $0x780] sm:$0xff]  }
 0x12a   : > { %5619 = vmatpush3.bf16.msra.mxu0 %v6263_v37  ;;  %v6315_v37 = vld [vmem:[%s7015_s21 + $0x640] sm:$0xff]  }
 0x12b   : > { %5641 = vmatpush3.bf16.msra.mxu1 %v6265_v38  ;;  %5620 = vmatprep.subr.bf16.mxu0 %v6266_v39  ;;  %v6317_v38 = vld [vmem:[%s7015_s21 + $0x6c0] sm:$0xff]   ;;  %v426_v39 = vcombine.high %v418_v35, %v418_v35 }
 0x12c   : > { %5642 = vmatprep.subr.bf16.mxu1 %v6268_v40  ;;  %v425_v40 = vrot.slane %v411_v36, %v7069_v42 }
 0x12e   : > { %5621 = vmatpush3.bf16.msra.mxu0 %v6267_v41  ;;  %v6316_v41 = vld [vmem:[%s7015_s21 + $0x600] sm:$0xff]  }
 0x12f   : > { %5643 = vmatpush3.bf16.msra.mxu1 %v6269_v43  ;;  %5622 = vmatprep.subr.bf16.mxu0 %v6270_v44  ;;  %v596_v43 = vpack.c.bf16 %v426_v39, %v426_v39  ;;  %v6318_v44 = vld [vmem:[%s7015_s21 + $0x680] sm:$0xff]  }
 0x130   : > { %5644 = vmatprep.subr.bf16.mxu1 %v6272_v45  ;;  %v427_v45 = vcombine.high %v425_v40, %v425_v40 }
 0x132   : > { %5623 = vmatpush3.bf16.msra.mxu0 %v6271_v46  ;;  %v6319_v46 = vld [vmem:[%s7015_s21 + $0x778] sm:$0xff]  }
 0x133   : > { %5645 = vmatpush3.bf16.msra.mxu1 %v6273_v47  ;;  %5624 = vmatprep.subr.bf16.mxu0 %v6274_v48  ;;  %v598_v47 = vpack.c.bf16 %v427_v45, %v427_v45  ;;  %v6322_v48 = vld [vmem:[%s7015_s21 + $0x7f8] sm:$0xff]   ;;  %v6358_v45 = vld [vmem:[%s7015_s21 + $0x830] sm:$0xff]  }
 0x134   : > { %5646 = vmatprep.subr.bf16.mxu1 %v6276_v49  ;;  %v6321_v49 = vld [vmem:[%s7015_s21 + $0x738] sm:$0xff]  }
 0x136   : > { %5625 = vmatpush3.bf16.msra.mxu0 %v6275_v50  ;;  %v595_v50 = vpack.c.bf16 %v418_v35, %v418_v35  ;;  %v6352_v35 = vld [vmem:[%s7015_s21 + $0x878] sm:$0xff]  }
 0x137   : > { %5647 = vmatpush3.bf16.msra.mxu1 %v6277_v51  ;;  %5626 = vmatprep.subr.bf16.mxu0 %v6278_v52  ;;  %v597_v51 = vpack.c.bf16 %v425_v40, %v425_v40  ;;  %v6323_v52 = vld [vmem:[%s7015_s21 + $0x7b8] sm:$0xff]  }
 0x138   : > { %5648 = vmatprep.subr.bf16.mxu1 %v6280_v53  ;;  %v6324_v53 = vld [vmem:[%s7015_s21 + $0x770] sm:$0xff]  }
 0x13a   : > { %5627 = vmatpush3.bf16.msra.mxu0 %v6279_v55  ;;  %v6325_v55 = vld [vmem:[%s7015_s21 + $0x730] sm:$0xff]  }
 0x13b   : > { %5649 = vmatpush3.bf16.msra.mxu1 %v6281_v58  ;;  %5628 = vmatprep.subr.bf16.mxu0 %v6282_v59  ;;  %v6327_v58 = vld [vmem:[%s7015_s21 + $0x7b0] sm:$0xff]   ;;  %v6328_v59 = vld [vmem:[%s7015_s21 + $0x768] sm:$0xff]  }
 0x13c   : > { %5650 = vmatprep.subr.bf16.mxu1 %v6284_v62  ;;  %v6330_v62 = vld [vmem:[%s7015_s21 + $0x7e8] sm:$0xff]  }
 0x13e   : > { %5629 = vmatpush3.bf16.msra.mxu0 %v6283_v63 }
 0x13f   : > { %5651 = vmatpush3.bf16.msra.mxu1 %v6285_v2  ;;  %5658 = vmatprep.subr.bf16.mxu0 %v6286_v3  ;;  %v6331_v3 = vld [vmem:[%s7015_s21 + $0x7a8] sm:$0xff]  }
 0x140   : > { %5680 = vmatprep.subr.bf16.mxu1 %v6289_v5 }
 0x141   : > { %4254 = vmatmul.mubr.bf16.vlgmr.msra.gmra.mxu0 %v591_v7 }
 0x142   : > { %4294 = vmatmul.mubr.bf16.vlgmr.msra.gmra.mxu1 %v593_v8  ;;  %5659 = vmatpush3.bf16.msra.mxu0 %v6288_v6  ;;  %v6332_v6 = vld [vmem:[%s7015_s21 + $0x760] sm:$0xff]  }
 0x143   : > { %5681 = vmatpush3.bf16.msra.mxu1 %v6290_v9  ;;  %5660 = vmatprep.subr.bf16.mxu0 %v6291_v10  ;;  %v6334_v8 = vld [vmem:[%s7015_s21 + $0x7e0] sm:$0xff]  }
 0x144   : > { %5682 = vmatprep.subr.bf16.mxu1 %v6293_v11  ;;  %4333 = vmatprep.mubr.bf16.mxu0 %v596_v43  ;;  %v6333_v10 = vld [vmem:[%s7015_s21 + $0x720] sm:$0xff]   ;;  %v6357_v43 = vld [vmem:[%s7015_s21 + $0x870] sm:$0xff]  }
 0x145   : > { %4373 = vmatprep.mubr.bf16.mxu1 %v598_v47  ;;  %v6335_v11 = vld [vmem:[%s7015_s21 + $0x7a0] sm:$0xff]  }
 0x146   : > { %5661 = vmatpush3.bf16.msra.mxu0 %v6292_v12  ;;  %v6336_v12 = vld [vmem:[%s7015_s21 + $0x758] sm:$0xff]  }
 0x147   : > { %5683 = vmatpush3.bf16.msra.mxu1 %v6294_v13  ;;  %5662 = vmatprep.subr.bf16.mxu0 %v6295_v14  ;;  %v6338_v13 = vld [vmem:[%s7015_s21 + $0x7d8] sm:$0xff]  }
 0x148   : > { %5684 = vmatprep.subr.bf16.mxu1 %v6297_v15  ;;  %v6337_v14 = vld [vmem:[%s7015_s21 + $0x718] sm:$0xff]  }
 0x149   : > { %v6339_v15 = vld [vmem:[%s7015_s21 + $0x798] sm:$0xff]  }
 0x14a   : > { %5663 = vmatpush3.bf16.msra.mxu0 %v6296_v16  ;;  %v6340_v16 = vld [vmem:[%s7015_s21 + $0x750] sm:$0xff]  }
 0x14b   : > { %5685 = vmatpush3.bf16.msra.mxu1 %v6298_v17  ;;  %5664 = vmatprep.subr.bf16.mxu0 %v6299_v18  ;;  %v6342_v17 = vld [vmem:[%s7015_s21 + $0x7d0] sm:$0xff]  }
 0x14c   : > { %5686 = vmatprep.subr.bf16.mxu1 %v6301_v19  ;;  %v6341_v18 = vld [vmem:[%s7015_s21 + $0x710] sm:$0xff]  }
 0x14d   : > { %v6343_v19 = vld [vmem:[%s7015_s21 + $0x790] sm:$0xff]  }
 0x14e   : > { %5665 = vmatpush3.bf16.msra.mxu0 %v6300_v20  ;;  %v6344_v20 = vld [vmem:[%s7015_s21 + $0x748] sm:$0xff]  }
 0x14f   : > { %5687 = vmatpush3.bf16.msra.mxu1 %v6302_v21  ;;  %5666 = vmatprep.subr.bf16.mxu0 %v6303_v22  ;;  %v6346_v21 = vld [vmem:[%s7015_s21 + $0x7c8] sm:$0xff]  }
 0x150   : > { %5688 = vmatprep.subr.bf16.mxu1 %v6305_v23  ;;  %v6345_v22 = vld [vmem:[%s7015_s21 + $0x708] sm:$0xff]   ;;  %v290_v23 = vld [vmem:[%s7007_s0 + $0x38] sm:$0xff] }
 0x152   : > { %5667 = vmatpush3.bf16.msra.mxu0 %v6304_v24  ;;  %v6347_v24 = vld [vmem:[%s7015_s21 + $0x788] sm:$0xff]  }
 0x153   : > { %5689 = vmatpush3.bf16.msra.mxu1 %v6306_v25  ;;  %5668 = vmatprep.subr.bf16.mxu0 %v6307_v26  ;;  %v435_v25 = vrot.slane %v290_v23, %v7069_v42  ;;  %v428_v26 = vcombine.high %v290_v23, %v290_v23 }
 0x154   : > { %5690 = vmatprep.subr.bf16.mxu1 %v6309_v27  ;;  %v6348_v27 = vld [vmem:[%s7015_s21 + $0x740] sm:$0xff]  }
 0x155   : > { %v599_v39 = vpack.c.bf16 %v435_v25, %v435_v25 }
 0x156   : > { %5669 = vmatpush3.bf16.msra.mxu0 %v6308_v28  ;;  %v6350_v28 = vld [vmem:[%s7015_s21 + $0x7c0] sm:$0xff]  }
 0x157   : > { %5691 = vmatpush3.bf16.msra.mxu1 %v6310_v29  ;;  %5670 = vmatprep.subr.bf16.mxu0 %v6311_v30  ;;  %v443_v29 = vcombine.high %v435_v25, %v435_v25  ;;  %v442_v30 = vrot.slane %v428_v26, %v7069_v42  ;;  %v6385_v26 = vld [vmem:[%s7015_s21 + $0x978] sm:$0xff]  }
 0x158   : > { %5692 = vmatprep.subr.bf16.mxu1 %v6313_v31  ;;  %v6349_v31 = vld [vmem:[%s7015_s21 + $0x700] sm:$0xff]  }
 0x159   : > { %v601_v40 = vpack.c.bf16 %v442_v30, %v442_v30 }
 0x15a   : > { %5671 = vmatpush3.bf16.msra.mxu0 %v6312_v32  ;;  %v600_v32 = vpack.c.bf16 %v443_v29, %v443_v29  ;;  %v6387_v29 = vld [vmem:[%s7015_s21 + $0x938] sm:$0xff]  }
 0x15b   : > { %5693 = vmatpush3.bf16.msra.mxu1 %v6314_v34  ;;  %5672 = vmatprep.subr.bf16.mxu0 %v6315_v37  ;;  %v444_v34 = vcombine.high %v442_v30, %v442_v30  ;;  %v6355_v37 = vld [vmem:[%s7015_s21 + $0x8f8] sm:$0xff]  }
 0x15c   : > { %5694 = vmatprep.subr.bf16.mxu1 %v6317_v38  ;;  %v6354_v38 = vld [vmem:[%s7015_s21 + $0x838] sm:$0xff]  }
 0x15d   : > { %v602_v36 = vpack.c.bf16 %v444_v34, %v444_v34  ;;  %v6392_v34 = vld [vmem:[%s7015_s21 + $0x9f0] sm:$0xff]  }
 0x15e   : > { %5673 = vmatpush3.bf16.msra.mxu0 %v6316_v41  ;;  %v6356_v41 = vld [vmem:[%s7015_s21 + $0x8b8] sm:$0xff]  }
 0x15f   : > { %5695 = vmatpush3.bf16.msra.mxu1 %v6318_v44  ;;  %5702 = vmatprep.subr.bf16.mxu0 %v6319_v46  ;;  %v6359_v44 = vld [vmem:[%s7015_s21 + $0x8f0] sm:$0xff]  }
 0x160   : > { %5724 = vmatprep.subr.bf16.mxu1 %v6322_v48  ;;  %v6360_v48 = vld [vmem:[%s7015_s21 + $0x8b0] sm:$0xff]  }
 0x161   : > { %v5410_v56 = vpop.f32.mrf.mxu0  ;;  %4334 = vmatmul.mubr.bf16.vlgmr.msra.gmra.mxu0 %v595_v50 }
 0x162   : > { %v5432_v57 = vpop.f32.mrf.mxu1  ;;  %4374 = vmatmul.mubr.bf16.vlgmr.msra.gmra.mxu1 %v597_v51  ;;  %5703 = vmatpush3.bf16.msra.mxu0 %v6321_v49  ;;  %v6361_v49 = vld [vmem:[%s7015_s21 + $0x868] sm:$0xff]  }
 0x163   : > { %5725 = vmatpush3.bf16.msra.mxu1 %v6323_v52  ;;  %v5411_v60 = vpop.f32.mrf.mxu0  ;;  %5704 = vmatprep.subr.bf16.mxu0 %v6324_v53  ;;  %v6363_v52 = vld [vmem:[%s7015_s21 + $0x8e8] sm:$0xff]  }
 0x164   : > { %v5433_v61 = vpop.f32.mrf.mxu1  ;;  %5726 = vmatprep.subr.bf16.mxu1 %v6326_v54  ;;  %v5412_v63 = vadd.f32 %v5411_v60, %v5410_v56  ;;  %4413 = vmatprep.mubr.bf16.mxu0 %v600_v32  ;;  %v6365_v60 = vld [vmem:[%s7015_s21 + $0x860] sm:$0xff]   ;;  %v6389_v32 = vld [vmem:[%s7015_s21 + $0x9b8] sm:$0xff]  }
 0x165   : > { %v5434_v0 = vadd.f32 %v5433_v61, %v5432_v57  ;;  %v5413_v2 = vpop.f32.mrf.mxu0  ;;  %4453 = vmatprep.mubr.bf16.mxu1 %v602_v36  ;;  %v6364_v57 = vld [vmem:[%s7015_s21 + $0x8a8] sm:$0xff]  }
 0x166   : > { %v5435_v4 = vpop.f32.mrf.mxu1  ;;  %5705 = vmatpush3.bf16.msra.mxu0 %v6325_v55  ;;  %v6362_v55 = vld [vmem:[%s7015_s21 + $0x828] sm:$0xff]   ;;  %v6368_v2 = vld [vmem:[%s7015_s21 + $0x8a0] sm:$0xff]  }
 0x167   : > { %v7293_v5 = vadd.f32 %v5434_v0, %v5412_v63  ;;  %5727 = vmatpush3.bf16.msra.mxu1 %v6327_v58  ;;  %v5414_v7 = vpop.f32.mrf.mxu0  ;;  %5706 = vmatprep.subr.bf16.mxu0 %v6328_v59  ;;  %v6371_v4 = vld [vmem:[%s7015_s21 + $0x8d8] sm:$0xff]  }
 0x168   : > { %5728 = vmatprep.subr.bf16.mxu1 %v6330_v62  ;;  %v5436_v9 = vpop.f32.mrf.mxu1  ;;  %v6367_v62 = vld [vmem:[%s7015_s21 + $0x8e0] sm:$0xff]   ;;  %v6373_v7 = vld [vmem:[%s7015_s21 + $0x850] sm:$0xff]  }
 0x169   : > { %v6374_v9 = vld [vmem:[%s7015_s21 + $0x810] sm:$0xff]  }
 0x16a   : > { %5707 = vmatpush3.bf16.msra.mxu0 %v6329_v1  ;;  %v6366_v1 = vld [vmem:[%s7015_s21 + $0x820] sm:$0xff]  }
 0x16b   : > { %5729 = vmatpush3.bf16.msra.mxu1 %v6331_v3  ;;  %5708 = vmatprep.subr.bf16.mxu0 %v6332_v6  ;;  %v6369_v3 = vld [vmem:[%s7015_s21 + $0x858] sm:$0xff]  }
 0x16c   : > { %5730 = vmatprep.subr.bf16.mxu1 %v6334_v8  ;;  %v6372_v6 = vld [vmem:[%s7015_s21 + $0x898] sm:$0xff]   ;;  %v6375_v8 = vld [vmem:[%s7015_s21 + $0x8d0] sm:$0xff]  }
 0x16e   : > { %5709 = vmatpush3.bf16.msra.mxu0 %v6333_v10  ;;  %v6376_v10 = vld [vmem:[%s7015_s21 + $0x890] sm:$0xff]  }
 0x16f   : > { %5731 = vmatpush3.bf16.msra.mxu1 %v6335_v11  ;;  %5710 = vmatprep.subr.bf16.mxu0 %v6336_v12  ;;  %v6377_v11 = vld [vmem:[%s7015_s21 + $0x848] sm:$0xff]  }
 0x170   : > { %5732 = vmatprep.subr.bf16.mxu1 %v6338_v13  ;;  %v6379_v12 = vld [vmem:[%s7015_s21 + $0x8c8] sm:$0xff]  }
 0x171   : > { %v6378_v13 = vld [vmem:[%s7015_s21 + $0x808] sm:$0xff]  }
 0x172   : > { %5711 = vmatpush3.bf16.msra.mxu0 %v6337_v14  ;;  %v291_v14 = vld [vmem:[%s7007_s0 + $0x40] sm:$0xff] }
 0x173   : > { %5733 = vmatpush3.bf16.msra.mxu1 %v6339_v15  ;;  %5712 = vmatprep.subr.bf16.mxu0 %v6340_v16  ;;  %v6380_v15 = vld [vmem:[%s7015_s21 + $0x888] sm:$0xff]   ;;  %v452_v16 = vrot.slane %v291_v14, %v7069_v42 }
 0x174   : > { %5734 = vmatprep.subr.bf16.mxu1 %v6342_v17  ;;  %v445_v17 = vcombine.high %v291_v14, %v291_v14 }
 0x175   : > { %v603_v30 = vpack.c.bf16 %v452_v16, %v452_v16 }
 0x176   : > { %5713 = vmatpush3.bf16.msra.mxu0 %v6341_v18  ;;  %v6381_v18 = vld [vmem:[%s7015_s21 + $0x840] sm:$0xff]  }
 0x177   : > { %5735 = vmatpush3.bf16.msra.mxu1 %v6343_v19  ;;  %5714 = vmatprep.subr.bf16.mxu0 %v6344_v20  ;;  %v6383_v19 = vld [vmem:[%s7015_s21 + $0x8c0] sm:$0xff]   ;;  %v460_v20 = vcombine.high %v452_v16, %v452_v16 }
 0x178   : > { %5736 = vmatprep.subr.bf16.mxu1 %v6346_v21  ;;  %v459_v21 = vrot.slane %v445_v17, %v7069_v42  ;;  %v6418_v17 = vld [vmem:[%s7015_s21 + $0xa78] sm:$0xff]  }
 0x179   : > { %v604_v23 = vpack.c.bf16 %v460_v20, %v460_v20  ;;  %v6421_v20 = vld [vmem:[%s7015_s21 + $0xaf8] sm:$0xff]  }
 0x17a   : > { %5715 = vmatpush3.bf16.msra.mxu0 %v6345_v22  ;;  %v6382_v22 = vld [vmem:[%s7015_s21 + $0x800] sm:$0xff]   ;;  %v461_v25 = vcombine.high %v459_v21, %v459_v21 }
 0x17b   : > { %5737 = vmatpush3.bf16.msra.mxu1 %v6347_v24  ;;  %5716 = vmatprep.subr.bf16.mxu0 %v6348_v27  ;;  %v6384_v24 = vld [vmem:[%s7015_s21 + $0x880] sm:$0xff]  }
 0x17c   : > { %5738 = vmatprep.subr.bf16.mxu1 %v6350_v28  ;;  %v606_v27 = vpack.c.bf16 %v461_v25, %v461_v25  ;;  %v6388_v28 = vld [vmem:[%s7015_s21 + $0x9f8] sm:$0xff]   ;;  %v6425_v25 = vld [vmem:[%s7015_s21 + $0xaf0] sm:$0xff]  }
 0x17e   : > { %5717 = vmatpush3.bf16.msra.mxu0 %v6349_v31  ;;  %v605_v31 = vpack.c.bf16 %v459_v21, %v459_v21 }
 0x17f   : > { %5739 = vmatpush3.bf16.msra.mxu1 %v6351_v33  ;;  %5746 = vmatprep.subr.bf16.mxu0 %v6352_v35  ;;  %v6390_v33 = vld [vmem:[%s7015_s21 + $0x970] sm:$0xff]  }
 0x180   : > { %5768 = vmatprep.subr.bf16.mxu1 %v6355_v37  ;;  %v6391_v35 = vld [vmem:[%s7015_s21 + $0x930] sm:$0xff]  }
 0x181   : > { %v5454_v46 = vpop.f32.mrf.mxu0  ;;  %4414 = vmatmul.mubr.bf16.vlgmr.msra.gmra.mxu0 %v599_v39  ;;  %v6394_v39 = vld [vmem:[%s7015_s21 + $0x968] sm:$0xff]  }
 0x182   : > { %v5476_v47 = vpop.f32.mrf.mxu1  ;;  %4454 = vmatmul.mubr.bf16.vlgmr.msra.gmra.mxu1 %v601_v40  ;;  %5747 = vmatpush3.bf16.msra.mxu0 %v6354_v38  ;;  %v6393_v38 = vld [vmem:[%s7015_s21 + $0x9b0] sm:$0xff]  }
 0x183   : > { %5769 = vmatpush3.bf16.msra.mxu1 %v6356_v41  ;;  %v5455_v50 = vpop.f32.mrf.mxu0  ;;  %5748 = vmatprep.subr.bf16.mxu0 %v6357_v43  ;;  %v6396_v43 = vld [vmem:[%s7015_s21 + $0x9e8] sm:$0xff]  }
 0x184   : > { %v5477_v51 = vpop.f32.mrf.mxu1  ;;  %5770 = vmatprep.subr.bf16.mxu1 %v6359_v44  ;;  %v5456_v53 = vadd.f32 %v5455_v50, %v5454_v46  ;;  %4493 = vmatprep.mubr.bf16.mxu0 %v604_v23  ;;  %v6395_v46 = vld [vmem:[%s7015_s21 + $0x928] sm:$0xff]   ;;  %v6422_v23 = vld [vmem:[%s7015_s21 + $0xab8] sm:$0xff]  }
 0x185   : > { %v5478_v54 = vadd.f32 %v5477_v51, %v5476_v47  ;;  %v5457_v56 = vpop.f32.mrf.mxu0  ;;  %4533 = vmatprep.mubr.bf16.mxu1 %v606_v27  ;;  %v6398_v51 = vld [vmem:[%s7015_s21 + $0x960] sm:$0xff]  }
 0x186   : > { %v5479_v58 = vpop.f32.mrf.mxu1  ;;  %v3936_v59 = vadd.f32 %v5456_v53, %v7293_v5  ;;  %5749 = vmatpush3.bf16.msra.mxu0 %v6358_v45  ;;  %v6370_v5 = vld [vmem:[%s7015_s21 + $0x818] sm:$0xff]   ;;  %v6400_v53 = vld [vmem:[%s7015_s21 + $0x9e0] sm:$0xff]  }
 0x187   : > { %5771 = vmatpush3.bf16.msra.mxu1 %v6360_v48  ;;  %v5458_v61 = vpop.f32.mrf.mxu0  ;;  %5750 = vmatprep.subr.bf16.mxu0 %v6361_v49  ;;  %v6397_v48 = vld [vmem:[%s7015_s21 + $0x9a8] sm:$0xff]   ;;  %v6399_v56 = vld [vmem:[%s7015_s21 + $0x920] sm:$0xff]   ;;  %v6402_v58 = vld [vmem:[%s7015_s21 + $0x958] sm:$0xff]  }
 0x188   : > { %5772 = vmatprep.subr.bf16.mxu1 %v6363_v52  ;;  %v5480_v63 = vpop.f32.mrf.mxu1  ;;  %v7333_v0 = vadd.f32 %v5478_v54, %v3936_v59  ;;  %v6404_v59 = vld [vmem:[%s7015_s21 + $0x9d8] sm:$0xff]  }
 0x189   : > { %v6405_v61 = vld [vmem:[%s7015_s21 + $0x998] sm:$0xff]   ;;  %v6408_v63 = vld [vmem:[%s7015_s21 + $0x9d0] sm:$0xff]  }
 0x18a   : > { %5751 = vmatpush3.bf16.msra.mxu0 %v6362_v55 }
 0x18b   : > { %5773 = vmatpush3.bf16.msra.mxu1 %v6364_v57  ;;  %5752 = vmatprep.subr.bf16.mxu0 %v6365_v60  ;;  %v6401_v57 = vld [vmem:[%s7015_s21 + $0x9a0] sm:$0xff]   ;;  %v6403_v60 = vld [vmem:[%s7015_s21 + $0x918] sm:$0xff]  }
 0x18c   : > { %5774 = vmatprep.subr.bf16.mxu1 %v6367_v62  ;;  %v6406_v62 = vld [vmem:[%s7015_s21 + $0x950] sm:$0xff]  }
 0x18e   : > { %5753 = vmatpush3.bf16.msra.mxu0 %v6366_v1  ;;  %v6409_v1 = vld [vmem:[%s7015_s21 + $0x990] sm:$0xff]  }
 0x18f   : > { %5775 = vmatpush3.bf16.msra.mxu1 %v6368_v2  ;;  %5754 = vmatprep.subr.bf16.mxu0 %v6369_v3  ;;  %v6410_v2 = vld [vmem:[%s7015_s21 + $0x948] sm:$0xff]  }
 0x190   : > { %5776 = vmatprep.subr.bf16.mxu1 %v6371_v4  ;;  %v6412_v3 = vld [vmem:[%s7015_s21 + $0x9c8] sm:$0xff]  }
 0x191   : > { %v6411_v4 = vld [vmem:[%s7015_s21 + $0x908] sm:$0xff]  }
 0x192   : > { %5755 = vmatpush3.bf16.msra.mxu0 %v6370_v5  ;;  %v6413_v5 = vld [vmem:[%s7015_s21 + $0x988] sm:$0xff]  }
 0x193   : > { %5777 = vmatpush3.bf16.msra.mxu1 %v6372_v6  ;;  %5756 = vmatprep.subr.bf16.mxu0 %v6373_v7  ;;  %v292_v6 = vld [vmem:[%s7007_s0 + $0x48] sm:$0xff] }
 0x194   : > { %5778 = vmatprep.subr.bf16.mxu1 %v6375_v8  ;;  %v6414_v7 = vld [vmem:[%s7015_s21 + $0x940] sm:$0xff]   ;;  %v469_v8 = vrot.slane %v292_v6, %v7069_v42 }
 0x196   : > { %5757 = vmatpush3.bf16.msra.mxu0 %v6374_v9  ;;  %v462_v9 = vcombine.high %v292_v6, %v292_v6  ;;  %v607_v21 = vpack.c.bf16 %v469_v8, %v469_v8  ;;  %v6450_v6 = vld [vmem:[%s7015_s21 + $0xa80] sm:$0xff]  }
 0x197   : > { %5779 = vmatpush3.bf16.msra.mxu1 %v6376_v10  ;;  %5758 = vmatprep.subr.bf16.mxu0 %v6377_v11  ;;  %v6416_v10 = vld [vmem:[%s7015_s21 + $0x9c0] sm:$0xff]   ;;  %v477_v11 = vcombine.high %v469_v8, %v469_v8  ;;  %v6451_v8 = vld [vmem:[%s7015_s21 + $0xb78] sm:$0xff]  }
 0x198   : > { %5780 = vmatprep.subr.bf16.mxu1 %v6379_v12  ;;  %v476_v12 = vrot.slane %v462_v9, %v7069_v42 }
 0x199   : > { %v608_v14 = vpack.c.bf16 %v477_v11, %v477_v11  ;;  %v6454_v11 = vld [vmem:[%s7015_s21 + $0xbf8] sm:$0xff]  }
 0x19a   : > { %5759 = vmatpush3.bf16.msra.mxu0 %v6378_v13  ;;  %v6415_v13 = vld [vmem:[%s7015_s21 + $0x900] sm:$0xff]   ;;  %v478_v16 = vcombine.high %v476_v12, %v476_v12 }
 0x19b   : > { %5781 = vmatpush3.bf16.msra.mxu1 %v6380_v15  ;;  %5760 = vmatprep.subr.bf16.mxu0 %v6381_v18  ;;  %v6417_v15 = vld [vmem:[%s7015_s21 + $0x980] sm:$0xff]  }
 0x19c   : > { %5782 = vmatprep.subr.bf16.mxu1 %v6383_v19  ;;  %v610_v18 = vpack.c.bf16 %v478_v16, %v478_v16  ;;  %v6420_v19 = vld [vmem:[%s7015_s21 + $0xa38] sm:$0xff]   ;;  %v6458_v16 = vld [vmem:[%s7015_s21 + $0xbf0] sm:$0xff]  }
 0x19e   : > { %5761 = vmatpush3.bf16.msra.mxu0 %v6382_v22  ;;  %v609_v22 = vpack.c.bf16 %v476_v12, %v476_v12 }
 0x19f   : > { %5783 = vmatpush3.bf16.msra.mxu1 %v6384_v24  ;;  %5790 = vmatprep.subr.bf16.mxu0 %v6385_v26  ;;  %v6423_v24 = vld [vmem:[%s7015_s21 + $0xa70] sm:$0xff]  }
 0x1a0   : > { %5812 = vmatprep.subr.bf16.mxu1 %v6388_v28  ;;  %v6424_v26 = vld [vmem:[%s7015_s21 + $0xa30] sm:$0xff]  }
 0x1a1   : > { %v5498_v36 = vpop.f32.mrf.mxu0  ;;  %4494 = vmatmul.mubr.bf16.vlgmr.msra.gmra.mxu0 %v603_v30  ;;  %v6427_v30 = vld [vmem:[%s7015_s21 + $0xa68] sm:$0xff]  }
 0x1a2   : > { %v5520_v37 = vpop.f32.mrf.mxu1  ;;  %4534 = vmatmul.mubr.bf16.vlgmr.msra.gmra.mxu1 %v605_v31  ;;  %5791 = vmatpush3.bf16.msra.mxu0 %v6387_v29  ;;  %v6426_v29 = vld [vmem:[%s7015_s21 + $0xab0] sm:$0xff]  }
 0x1a3   : > { %5813 = vmatpush3.bf16.msra.mxu1 %v6389_v32  ;;  %v5499_v40 = vpop.f32.mrf.mxu0  ;;  %5792 = vmatprep.subr.bf16.mxu0 %v6390_v33  ;;  %v6429_v33 = vld [vmem:[%s7015_s21 + $0xae8] sm:$0xff]  }
 0x1a4   : > { %v5521_v41 = vpop.f32.mrf.mxu1  ;;  %5814 = vmatprep.subr.bf16.mxu1 %v6392_v34  ;;  %v5500_v44 = vadd.f32 %v5499_v40, %v5498_v36  ;;  %4573 = vmatprep.mubr.bf16.mxu0 %v608_v14  ;;  %v6428_v36 = vld [vmem:[%s7015_s21 + $0xa28] sm:$0xff]   ;;  %v6455_v14 = vld [vmem:[%s7015_s21 + $0xbb8] sm:$0xff]  }
 0x1a5   : > { %v5522_v45 = vadd.f32 %v5521_v41, %v5520_v37  ;;  %v5501_v47 = vpop.f32.mrf.mxu0  ;;  %4613 = vmatprep.mubr.bf16.mxu1 %v610_v18  ;;  %v6431_v41 = vld [vmem:[%s7015_s21 + $0xa60] sm:$0xff]  }
 0x1a6   : > { %v5523_v49 = vpop.f32.mrf.mxu1  ;;  %v4016_v50 = vadd.f32 %v5500_v44, %v7333_v0  ;;  %5793 = vmatpush3.bf16.msra.mxu0 %v6391_v35  ;;  %v6407_v0 = vld [vmem:[%s7015_s21 + $0x910] sm:$0xff]   ;;  %v6433_v44 = vld [vmem:[%s7015_s21 + $0xae0] sm:$0xff]  }
 0x1a7   : > { %5815 = vmatpush3.bf16.msra.mxu1 %v6393_v38  ;;  %v5502_v52 = vpop.f32.mrf.mxu0  ;;  %5794 = vmatprep.subr.bf16.mxu0 %v6394_v39  ;;  %v6430_v38 = vld [vmem:[%s7015_s21 + $0xaa8] sm:$0xff]   ;;  %v6432_v47 = vld [vmem:[%s7015_s21 + $0xa20] sm:$0xff]   ;;  %v6435_v49 = vld [vmem:[%s7015_s21 + $0xa58] sm:$0xff]  }
 0x1a8   : > { %5816 = vmatprep.subr.bf16.mxu1 %v6396_v43  ;;  %v5524_v54 = vpop.f32.mrf.mxu1  ;;  %v7371_v55 = vadd.f32 %v5522_v45, %v4016_v50  ;;  %v6437_v50 = vld [vmem:[%s7015_s21 + $0xad8] sm:$0xff]  }
 0x1a9   : > { %v6438_v52 = vld [vmem:[%s7015_s21 + $0xa98] sm:$0xff]   ;;  %v6441_v54 = vld [vmem:[%s7015_s21 + $0xad0] sm:$0xff]  }
 0x1aa   : > { %5795 = vmatpush3.bf16.msra.mxu0 %v6395_v46 }
 0x1ab   : > { %5817 = vmatpush3.bf16.msra.mxu1 %v6397_v48  ;;  %5796 = vmatprep.subr.bf16.mxu0 %v6398_v51  ;;  %v6434_v48 = vld [vmem:[%s7015_s21 + $0xaa0] sm:$0xff]   ;;  %v6436_v51 = vld [vmem:[%s7015_s21 + $0xa18] sm:$0xff]  }
 0x1ac   : > { %5818 = vmatprep.subr.bf16.mxu1 %v6400_v53  ;;  %v6439_v53 = vld [vmem:[%s7015_s21 + $0xa50] sm:$0xff]  }
 0x1ae   : > { %5797 = vmatpush3.bf16.msra.mxu0 %v6399_v56  ;;  %v6442_v56 = vld [vmem:[%s7015_s21 + $0xa90] sm:$0xff]  }
 0x1af   : > { %5819 = vmatpush3.bf16.msra.mxu1 %v6401_v57  ;;  %5798 = vmatprep.subr.bf16.mxu0 %v6402_v58  ;;  %v6443_v57 = vld [vmem:[%s7015_s21 + $0xa48] sm:$0xff]  }
 0x1b0   : > { %5820 = vmatprep.subr.bf16.mxu1 %v6404_v59  ;;  %v6445_v58 = vld [vmem:[%s7015_s21 + $0xac8] sm:$0xff]  }
 0x1b1   : > { %v6444_v59 = vld [vmem:[%s7015_s21 + $0xa08] sm:$0xff]  }
 0x1b2   : > { %5799 = vmatpush3.bf16.msra.mxu0 %v6403_v60  ;;  %v6446_v60 = vld [vmem:[%s7015_s21 + $0xa88] sm:$0xff]  }
 0x1b3   : > { %5821 = vmatpush3.bf16.msra.mxu1 %v6405_v61  ;;  %5800 = vmatprep.subr.bf16.mxu0 %v6406_v62  ;;  %v293_v61 = vld [vmem:[%s7007_s0 + $0x50] sm:$0xff]  ;;  %v6447_v62 = vld [vmem:[%s7015_s21 + $0xa40] sm:$0xff]  }
 0x1b4   : > { %5822 = vmatprep.subr.bf16.mxu1 %v6408_v63  ;;  %v486_v63 = vrot.slane %v293_v61, %v7069_v42 }
 0x1b6   : > { %5801 = vmatpush3.bf16.msra.mxu0 %v6407_v0  ;;  %v479_v0 = vcombine.high %v293_v61, %v293_v61  ;;  %v611_v12 = vpack.c.bf16 %v486_v63, %v486_v63  ;;  %v6483_v61 = vld [vmem:[%s7015_s21 + $0xb80] sm:$0xff]  }
 0x1b7   : > { %5823 = vmatpush3.bf16.msra.mxu1 %v6409_v1  ;;  %5802 = vmatprep.subr.bf16.mxu0 %v6410_v2  ;;  %v6449_v1 = vld [vmem:[%s7015_s21 + $0xac0] sm:$0xff]   ;;  %v494_v2 = vcombine.high %v486_v63, %v486_v63  ;;  %v6484_v63 = vld [vmem:[%s7015_s21 + $0xc78] sm:$0xff]  }
 0x1b8   : > { %5824 = vmatprep.subr.bf16.mxu1 %v6412_v3  ;;  %v493_v3 = vrot.slane %v479_v0, %v7069_v42 }
 0x1ba   : > { %5803 = vmatpush3.bf16.msra.mxu0 %v6411_v4  ;;  %v6448_v4 = vld [vmem:[%s7015_s21 + $0xa00] sm:$0xff]  }
 0x1bb   : > { %5825 = vmatpush3.bf16.msra.mxu1 %v6413_v5  ;;  %5804 = vmatprep.subr.bf16.mxu0 %v6414_v7  ;;  %v612_v5 = vpack.c.bf16 %v494_v2, %v494_v2  ;;  %v495_v7 = vcombine.high %v493_v3, %v493_v3 }
 0x1bc   : > { %5826 = vmatprep.subr.bf16.mxu1 %v6416_v10  ;;  %v6453_v10 = vld [vmem:[%s7015_s21 + $0xb38] sm:$0xff]  }
 0x1bd   : > { %v614_v9 = vpack.c.bf16 %v495_v7, %v495_v7 }
 0x1be   : > { %5805 = vmatpush3.bf16.msra.mxu0 %v6415_v13  ;;  %v613_v13 = vpack.c.bf16 %v493_v3, %v493_v3  ;;  %v6487_v3 = vld [vmem:[%s7015_s21 + $0xc70] sm:$0xff]  }
 0x1bf   : > { %5827 = vmatpush3.bf16.msra.mxu1 %v6417_v15  ;;  %5834 = vmatprep.subr.bf16.mxu0 %v6418_v17  ;;  %v6456_v15 = vld [vmem:[%s7015_s21 + $0xb70] sm:$0xff]  }
 0x1c0   : > { %5856 = vmatprep.subr.bf16.mxu1 %v6421_v20  ;;  %v6457_v17 = vld [vmem:[%s7015_s21 + $0xb30] sm:$0xff]  }
 0x1c1   : > { %v5542_v27 = vpop.f32.mrf.mxu0  ;;  %4574 = vmatmul.mubr.bf16.vlgmr.msra.gmra.mxu0 %v607_v21  ;;  %v6459_v20 = vld [vmem:[%s7015_s21 + $0xbb0] sm:$0xff]   ;;  %v6460_v21 = vld [vmem:[%s7015_s21 + $0xb68] sm:$0xff]  }
 0x1c2   : > { %v5564_v28 = vpop.f32.mrf.mxu1  ;;  %4614 = vmatmul.mubr.bf16.vlgmr.msra.gmra.mxu1 %v609_v22  ;;  %5835 = vmatpush3.bf16.msra.mxu0 %v6420_v19 }
 0x1c3   : > { %5857 = vmatpush3.bf16.msra.mxu1 %v6422_v23  ;;  %v5543_v31 = vpop.f32.mrf.mxu0  ;;  %5836 = vmatprep.subr.bf16.mxu0 %v6423_v24  ;;  %v6462_v24 = vld [vmem:[%s7015_s21 + $0xbe8] sm:$0xff]  }
 0x1c4   : > { %v5565_v32 = vpop.f32.mrf.mxu1  ;;  %5858 = vmatprep.subr.bf16.mxu1 %v6425_v25  ;;  %v5544_v34 = vadd.f32 %v5543_v31, %v5542_v27  ;;  %4653 = vmatprep.mubr.bf16.mxu0 %v612_v5  ;;  %v6461_v27 = vld [vmem:[%s7015_s21 + $0xb28] sm:$0xff]  }
 0x1c5   : > { %v5566_v35 = vadd.f32 %v5565_v32, %v5564_v28  ;;  %v5545_v37 = vpop.f32.mrf.mxu0  ;;  %4693 = vmatprep.mubr.bf16.mxu1 %v614_v9  ;;  %v6464_v32 = vld [vmem:[%s7015_s21 + $0xb60] sm:$0xff]   ;;  %v6489_v9 = vld [vmem:[%s7015_s21 + $0xc68] sm:$0xff]  }
 0x1c6   : > { %v5567_v39 = vpop.f32.mrf.mxu1  ;;  %v4096_v40 = vadd.f32 %v5544_v34, %v7371_v55  ;;  %5837 = vmatpush3.bf16.msra.mxu0 %v6424_v26  ;;  %v6440_v55 = vld [vmem:[%s7015_s21 + $0xa10] sm:$0xff]   ;;  %v6466_v34 = vld [vmem:[%s7015_s21 + $0xbe0] sm:$0xff]  }
 0x1c7   : > { %5859 = vmatpush3.bf16.msra.mxu1 %v6426_v29  ;;  %v5546_v43 = vpop.f32.mrf.mxu0  ;;  %5838 = vmatprep.subr.bf16.mxu0 %v6427_v30  ;;  %v6463_v29 = vld [vmem:[%s7015_s21 + $0xba8] sm:$0xff]   ;;  %v6465_v37 = vld [vmem:[%s7015_s21 + $0xb20] sm:$0xff]   ;;  %v6468_v39 = vld [vmem:[%s7015_s21 + $0xb58] sm:$0xff]  }
 0x1c8   : > { %5860 = vmatprep.subr.bf16.mxu1 %v6429_v33  ;;  %v5568_v45 = vpop.f32.mrf.mxu1  ;;  %v7409_v46 = vadd.f32 %v5566_v35, %v4096_v40  ;;  %v6470_v40 = vld [vmem:[%s7015_s21 + $0xbd8] sm:$0xff]  }
 0x1c9   : > { %v6471_v43 = vld [vmem:[%s7015_s21 + $0xb98] sm:$0xff]   ;;  %v6474_v45 = vld [vmem:[%s7015_s21 + $0xbd0] sm:$0xff]  }
 0x1ca   : > { %5839 = vmatpush3.bf16.msra.mxu0 %v6428_v36 }
 0x1cb   : > { %5861 = vmatpush3.bf16.msra.mxu1 %v6430_v38  ;;  %5840 = vmatprep.subr.bf16.mxu0 %v6431_v41  ;;  %v6467_v38 = vld [vmem:[%s7015_s21 + $0xba0] sm:$0xff]   ;;  %v6469_v41 = vld [vmem:[%s7015_s21 + $0xb18] sm:$0xff]  }
 0x1cc   : > { %5862 = vmatprep.subr.bf16.mxu1 %v6433_v44  ;;  %v6472_v44 = vld [vmem:[%s7015_s21 + $0xb50] sm:$0xff]  }
 0x1ce   : > { %5841 = vmatpush3.bf16.msra.mxu0 %v6432_v47  ;;  %v6475_v47 = vld [vmem:[%s7015_s21 + $0xb90] sm:$0xff]  }
 0x1cf   : > { %5863 = vmatpush3.bf16.msra.mxu1 %v6434_v48  ;;  %5842 = vmatprep.subr.bf16.mxu0 %v6435_v49  ;;  %v6476_v48 = vld [vmem:[%s7015_s21 + $0xb48] sm:$0xff]  }
 0x1d0   : > { %5864 = vmatprep.subr.bf16.mxu1 %v6437_v50  ;;  %v6478_v49 = vld [vmem:[%s7015_s21 + $0xbc8] sm:$0xff]  }
 0x1d1   : > { %v6477_v50 = vld [vmem:[%s7015_s21 + $0xb08] sm:$0xff]  }
 0x1d2   : > { %5843 = vmatpush3.bf16.msra.mxu0 %v6436_v51  ;;  %v6479_v51 = vld [vmem:[%s7015_s21 + $0xb88] sm:$0xff]  }
 0x1d3   : > { %5865 = vmatpush3.bf16.msra.mxu1 %v6438_v52  ;;  %5844 = vmatprep.subr.bf16.mxu0 %v6439_v53  ;;  %v294_v52 = vld [vmem:[%s7007_s0 + $0x58] sm:$0xff]  ;;  %v6480_v53 = vld [vmem:[%s7015_s21 + $0xb40] sm:$0xff]  }
 0x1d4   : > { %5866 = vmatprep.subr.bf16.mxu1 %v6441_v54  ;;  %v503_v54 = vrot.slane %v294_v52, %v7069_v42 }
 0x1d6   : > { %5845 = vmatpush3.bf16.msra.mxu0 %v6440_v55  ;;  %v496_v55 = vcombine.high %v294_v52, %v294_v52 }
 0x1d7   : > { %5867 = vmatpush3.bf16.msra.mxu1 %v6442_v56  ;;  %5846 = vmatprep.subr.bf16.mxu0 %v6443_v57  ;;  %v6482_v56 = vld [vmem:[%s7015_s21 + $0xbc0] sm:$0xff]   ;;  %v511_v57 = vcombine.high %v503_v54, %v503_v54 }
 0x1d8   : > { %5868 = vmatprep.subr.bf16.mxu1 %v6445_v58  ;;  %v510_v58 = vrot.slane %v496_v55, %v7069_v42  ;;  %v6486_v42 = vld [vmem:[%s7015_s21 + $0xc38] sm:$0xff]  }
 0x1da   : > { %5847 = vmatpush3.bf16.msra.mxu0 %v6444_v59  ;;  %v6481_v59 = vld [vmem:[%s7015_s21 + $0xb00] sm:$0xff]   ;;  %v617_v2 = vpack.c.bf16 %v510_v58, %v510_v58 }
 0x1db   : > { %5869 = vmatpush3.bf16.msra.mxu1 %v6446_v60  ;;  %5848 = vmatprep.subr.bf16.mxu0 %v6447_v62  ;;  %v616_v60 = vpack.c.bf16 %v511_v57, %v511_v57  ;;  %v512_v62 = vcombine.high %v510_v58, %v510_v58 }
 0x1dc   : > { %5870 = vmatprep.subr.bf16.mxu1 %v6449_v1  ;;  %v615_v1 = vpack.c.bf16 %v503_v54, %v503_v54 }
 0x1dd   : > { %v618_v0 = vpack.c.bf16 %v512_v62, %v512_v62 }
 0x1de   : > { %5849 = vmatpush3.bf16.msra.mxu0 %v6448_v4 }
 0x1df   : > { %5871 = vmatpush3.bf16.msra.mxu1 %v6450_v6  ;;  %5878 = vmatprep.subr.bf16.mxu0 %v6451_v8  ;;  %v6488_v6 = vld [vmem:[%s7015_s21 + $0xc30] sm:$0xff]  }
 0x1e0   : > { %5900 = vmatprep.subr.bf16.mxu1 %v6454_v11 }
 0x1e1   : > { %v5586_v18 = vpop.f32.mrf.mxu0  ;;  %4654 = vmatmul.mubr.bf16.vlgmr.msra.gmra.mxu0 %v611_v12 }
 0x1e2   : > { %v5608_v19 = vpop.f32.mrf.mxu1  ;;  %4694 = vmatmul.mubr.bf16.vlgmr.msra.gmra.mxu1 %v613_v13  ;;  %5879 = vmatpush3.bf16.msra.mxu0 %v6453_v10 }
 0x1e3   : > { %5901 = vmatpush3.bf16.msra.mxu1 %v6455_v14  ;;  %v5587_v22 = vpop.f32.mrf.mxu0  ;;  %5880 = vmatprep.subr.bf16.mxu0 %v6456_v15  ;;  %v6490_v15 = vld [vmem:[%s7015_s21 + $0xc28] sm:$0xff]  }
 0x1e4   : > { %v5609_v23 = vpop.f32.mrf.mxu1  ;;  %5902 = vmatprep.subr.bf16.mxu1 %v6458_v16  ;;  %v5588_v25 = vadd.f32 %v5587_v22, %v5586_v18  ;;  %4733 = vmatprep.mubr.bf16.mxu0 %v616_v60  ;;  %v6492_v22 = vld [vmem:[%s7015_s21 + $0xc20] sm:$0xff]  }
 0x1e5   : > { %v5610_v26 = vadd.f32 %v5609_v23, %v5608_v19  ;;  %v5589_v28 = vpop.f32.mrf.mxu0  ;;  %4773 = vmatprep.mubr.bf16.mxu1 %v618_v0  ;;  %v4985_v19 = vld.sshfl [vmem:[%s7007_s0 + $0x60] sm:$0x33 pattern:$0x76325410] }
 0x1e6   : > { %v5611_v30 = vpop.f32.mrf.mxu1  ;;  %v4176_v31 = vadd.f32 %v5588_v25, %v7409_v46  ;;  %5881 = vmatpush3.bf16.msra.mxu0 %v6457_v17  ;;  %v6473_v46 = vld [vmem:[%s7015_s21 + $0xb10] sm:$0xff]   ;;  %v6491_v17 = vld [vmem:[%s7015_s21 + $0xc60] sm:$0xff]   ;;  %v6494_v25 = vld [vmem:[%s7015_s21 + $0xc18] sm:$0xff]  }
 0x1e7   : > { %5903 = vmatpush3.bf16.msra.mxu1 %v6459_v20  ;;  %v5590_v33 = vpop.f32.mrf.mxu0  ;;  %5882 = vmatprep.subr.bf16.mxu0 %v6460_v21  ;;  %v520_v21 = vcombine.high %v4985_v19, %v4985_v19  ;;  %v6497_v28 = vld [vmem:[%s7015_s21 + $0xc48] sm:$0xff]   ;;  %v6499_v30 = vld [vmem:[%s7015_s21 + $0xc40] sm:$0xff]  }
 0x1e8   : > { %5904 = vmatprep.subr.bf16.mxu1 %v6462_v24  ;;  %v5612_v35 = vpop.f32.mrf.mxu1  ;;  %v7447_v36 = vadd.f32 %v5610_v26, %v4176_v31  ;;  %v6493_v24 = vld [vmem:[%s7015_s21 + $0xc58] sm:$0xff]   ;;  %v6495_v26 = vld [vmem:[%s7015_s21 + $0xc50] sm:$0xff]   ;;  %v6500_v31 = vld [vmem:[%s7015_s21 + $0xc00] sm:$0xff]  }
 0x1e9   : > { %v620_v23 = vpack.c.bf16 %v520_v21, %v520_v21 }
 0x1ea   : > { %5883 = vmatpush3.bf16.msra.mxu0 %v6461_v27  ;;  %v6496_v27 = vld [vmem:[%s7015_s21 + $0xc10] sm:$0xff]  }
 0x1eb   : > { %5905 = vmatpush3.bf16.msra.mxu1 %v6463_v29  ;;  %5884 = vmatprep.subr.bf16.mxu0 %v6464_v32  ;;  %v6498_v29 = vld [vmem:[%s7015_s21 + $0xc08] sm:$0xff]   ;;  %v619_v32 = vpack.c.bf16 %v4985_v19, %v4985_v19 }
 0x1ec   : > { %5906 = vmatprep.subr.bf16.mxu1 %v6466_v34 }
 0x1ee   : > { %5885 = vmatpush3.bf16.msra.mxu0 %v6465_v37 }
 0x1ef   : > { %5907 = vmatpush3.bf16.msra.mxu1 %v6467_v38  ;;  %5886 = vmatprep.subr.bf16.mxu0 %v6468_v39 }
 0x1f0   : > { %5908 = vmatprep.subr.bf16.mxu1 %v6470_v40 }
 0x1f2   : > { %5887 = vmatpush3.bf16.msra.mxu0 %v6469_v41 }
 0x1f3   : > { %5909 = vmatpush3.bf16.msra.mxu1 %v6471_v43  ;;  %5888 = vmatprep.subr.bf16.mxu0 %v6472_v44 }
 0x1f4   : > { %5910 = vmatprep.subr.bf16.mxu1 %v6474_v45 }
 0x1f6   : > { %5889 = vmatpush3.bf16.msra.mxu0 %v6473_v46 }
 0x1f7   : > { %5911 = vmatpush3.bf16.msra.mxu1 %v6475_v47  ;;  %5890 = vmatprep.subr.bf16.mxu0 %v6476_v48 }
 0x1f8   : > { %5912 = vmatprep.subr.bf16.mxu1 %v6478_v49 }
 0x1fa   : > { %5891 = vmatpush3.bf16.msra.mxu0 %v6477_v50 }
 0x1fb   : > { %5913 = vmatpush3.bf16.msra.mxu1 %v6479_v51  ;;  %5892 = vmatprep.subr.bf16.mxu0 %v6480_v53 }
 0x1fc   : > { %5914 = vmatprep.subr.bf16.mxu1 %v6482_v56 }
 0x1fe   : > { %5893 = vmatpush3.bf16.msra.mxu0 %v6481_v59 }
 0x1ff   : > { %5915 = vmatpush3.bf16.msra.mxu1 %v6483_v61  ;;  %5922 = vmatprep.subr.bf16.mxu0 %v6484_v63 }
 0x201   : > { %v5630_v4 = vpop.f32.mrf.mxu0  ;;  %4734 = vmatmul.mubr.bf16.vlgmr.msra.gmra.mxu0 %v615_v1 }
 0x202   : > { %v5652_v5 = vpop.f32.mrf.mxu1  ;;  %4774 = vmatmul.mubr.bf16.vlgmr.msra.gmra.mxu1 %v617_v2  ;;  %5923 = vmatpush3.bf16.msra.mxu0 %v6486_v42 }
 0x203   : > { %v5631_v7 = vpop.f32.mrf.mxu0  ;;  %5924 = vmatprep.subr.bf16.mxu0 %v6487_v3  ;;  %4813 = vmatprep.mubr.bf16.mxu0 %v620_v23 }
 0x204   : > { %v5653_v8 = vpop.f32.mrf.mxu1  ;;  %v5632_v10 = vadd.f32 %v5631_v7, %v5630_v4 }
 0x205   : > { %v5654_v11 = vadd.f32 %v5653_v8, %v5652_v5  ;;  %v5633_v12 = vpop.f32.mrf.mxu0 }
 0x206   : > { %v5655_v13 = vpop.f32.mrf.mxu1  ;;  %v4256_v14 = vadd.f32 %v5632_v10, %v7447_v36  ;;  %5925 = vmatpush3.bf16.msra.mxu0 %v6488_v6 }
 0x207   : > { %v5634_v16 = vpop.f32.mrf.mxu0  ;;  %5926 = vmatprep.subr.bf16.mxu0 %v6489_v9 }
 0x208   : > { %v5656_v18 = vpop.f32.mrf.mxu1  ;;  %v4296_v20 = vadd.f32 %v5654_v11, %v4256_v14 }
 0x20a   : > { %5927 = vmatpush3.bf16.msra.mxu0 %v6490_v15 }
 0x20b   : > { %5928 = vmatprep.subr.bf16.mxu0 %v6491_v17 }
 0x20e   : > { %5929 = vmatpush3.bf16.msra.mxu0 %v6492_v22 }
 0x20f   : > { %5930 = vmatprep.subr.bf16.mxu0 %v6493_v24 }
 0x212   : > { %5931 = vmatpush3.bf16.msra.mxu0 %v6494_v25 }
 0x213   : > { %5932 = vmatprep.subr.bf16.mxu0 %v6495_v26 }
 0x216   : > { %5933 = vmatpush3.bf16.msra.mxu0 %v6496_v27 }
 0x217   : > { %5934 = vmatprep.subr.bf16.mxu0 %v6497_v28 }
 0x21a   : > { %5935 = vmatpush3.bf16.msra.mxu0 %v6498_v29 }
 0x21b   : > { %5936 = vmatprep.subr.bf16.mxu0 %v6499_v30 }
 0x21e   : > { %5937 = vmatpush3.bf16.msra.mxu0 %v6500_v31 }
 0x221   : > { %v5674_v33 = vpop.f32.mrf.mxu0  ;;  %4814 = vmatmul.mubr.bf16.vlgmr.msra.gmra.mxu0 %v619_v32 }
 0x222   : > { %v5696_v34 = vpop.f32.mrf.mxu1 }
 0x223   : > { %v5675_v35 = vpop.f32.mrf.mxu0 }
 0x224   : > { %v5697_v36 = vpop.f32.mrf.mxu1  ;;  %v5676_v37 = vadd.f32 %v5675_v35, %v5674_v33 }
 0x225   : > { %v5698_v38 = vadd.f32 %v5697_v36, %v5696_v34  ;;  %v5677_v39 = vpop.f32.mrf.mxu0 }
 0x226   : > { %v5699_v40 = vpop.f32.mrf.mxu1  ;;  %v4336_v41 = vadd.f32 %v5676_v37, %v4296_v20 }
 0x227   : > { %v5678_v43 = vpop.f32.mrf.mxu0 }
 0x228   : > { %v5700_v44 = vpop.f32.mrf.mxu1  ;;  %v4376_v45 = vadd.f32 %v5698_v38, %v4336_v41 }
 0x241   : > { %v5718_v46 = vpop.f32.mrf.mxu0 }
 0x242   : > { %v5740_v47 = vpop.f32.mrf.mxu1 }
 0x243   : > { %v5719_v48 = vpop.f32.mrf.mxu0 }
 0x244   : > { %v5741_v49 = vpop.f32.mrf.mxu1  ;;  %v5720_v50 = vadd.f32 %v5719_v48, %v5718_v46 }
 0x245   : > { %v5742_v51 = vadd.f32 %v5741_v49, %v5740_v47  ;;  %v5721_v52 = vpop.f32.mrf.mxu0 }
 0x246   : > { %v5743_v53 = vpop.f32.mrf.mxu1  ;;  %v4416_v54 = vadd.f32 %v5720_v50, %v4376_v45  ;;  %v282_v45 = vld [vmem:[%s7030_s8] sm:$0x3] }
 0x247   : > { %v5722_v55 = vpop.f32.mrf.mxu0 }
 0x248   : > { %v5744_v56 = vpop.f32.mrf.mxu1  ;;  %v4456_v57 = vadd.f32 %v5742_v51, %v4416_v54 }
 0x261   : > { %v5762_v58 = vpop.f32.mrf.mxu0 }
 0x262   : > { %v5784_v59 = vpop.f32.mrf.mxu1 }
 0x263   : > { %v5763_v60 = vpop.f32.mrf.mxu0 }
 0x264   : > { %v5785_v61 = vpop.f32.mrf.mxu1  ;;  %v5764_v62 = vadd.f32 %v5763_v60, %v5762_v58 }
 0x265   : > { %v5786_v63 = vadd.f32 %v5785_v61, %v5784_v59  ;;  %v5765_v0 = vpop.f32.mrf.mxu0 }
 0x266   : > { %v5787_v1 = vpop.f32.mrf.mxu1  ;;  %v4496_v2 = vadd.f32 %v5764_v62, %v4456_v57 }
 0x267   : > { %v5766_v42 = vpop.f32.mrf.mxu0 }
 0x268   : > { %v5788_v3 = vpop.f32.mrf.mxu1  ;;  %v4536_v4 = vadd.f32 %v5786_v63, %v4496_v2 }
 0x281   : > { %v5806_v5 = vpop.f32.mrf.mxu0 }
 0x282   : > { %v5828_v6 = vpop.f32.mrf.mxu1 }
 0x283   : > { %v5807_v7 = vpop.f32.mrf.mxu0 }
 0x284   : > { %v5829_v8 = vpop.f32.mrf.mxu1  ;;  %v5808_v9 = vadd.f32 %v5807_v7, %v5806_v5 }
 0x285   : > { %v5830_v10 = vadd.f32 %v5829_v8, %v5828_v6  ;;  %v5809_v11 = vpop.f32.mrf.mxu0 }
 0x286   : > { %v5831_v12 = vpop.f32.mrf.mxu1  ;;  %v4576_v13 = vadd.f32 %v5808_v9, %v4536_v4 }
 0x287   : > { %v5810_v14 = vpop.f32.mrf.mxu0 }
 0x288   : > { %v5832_v15 = vpop.f32.mrf.mxu1  ;;  %v4616_v16 = vadd.f32 %v5830_v10, %v4576_v13 }
 0x2a1   : > { %v5850_v17 = vpop.f32.mrf.mxu0 }
 0x2a2   : > { %v5872_v18 = vpop.f32.mrf.mxu1 }
 0x2a3   : > { %v5851_v19 = vpop.f32.mrf.mxu0 }
 0x2a4   : > { %v5873_v20 = vpop.f32.mrf.mxu1  ;;  %v5852_v33 = vadd.f32 %v5851_v19, %v5850_v17 }
 0x2a5   : > { %v5853_v21 = vpop.f32.mrf.mxu0  ;;  %v5874_v35 = vadd.f32 %v5873_v20, %v5872_v18 }
 0x2a6   : > { %v5875_v22 = vpop.f32.mrf.mxu1  ;;  %v4656_v34 = vadd.f32 %v5852_v33, %v4616_v16 }
 0x2a7   : > { %v5854_v23 = vpop.f32.mrf.mxu0 }
 0x2a8   : > { %v5876_v24 = vpop.f32.mrf.mxu1  ;;  %v4696_v37 = vadd.f32 %v5874_v35, %v4656_v34 }
 0x2c1   : > { %v5894_v25 = vpop.f32.mrf.mxu0 }
 0x2c2   : > { %v5916_v26 = vpop.f32.mrf.mxu1 }
 0x2c3   : > { %v5895_v27 = vpop.f32.mrf.mxu0 }
 0x2c4   : > { %v5917_v28 = vpop.f32.mrf.mxu1  ;;  %v5896_v36 = vadd.f32 %v5895_v27, %v5894_v25 }
 0x2c5   : > { %v5897_v29 = vpop.f32.mrf.mxu0  ;;  %v5918_v39 = vadd.f32 %v5917_v28, %v5916_v26 }
 0x2c6   : > { %v5919_v30 = vpop.f32.mrf.mxu1  ;;  %v4736_v38 = vadd.f32 %v5896_v36, %v4696_v37 }
 0x2c7   : > { %v5898_v31 = vpop.f32.mrf.mxu0 }
 0x2c8   : > { %v5920_v32 = vpop.f32.mrf.mxu1  ;;  %v4776_v43 = vadd.f32 %v5918_v39, %v4736_v38 }
 0x2e1   : > { %v5938_v40 = vpop.f32.mrf.mxu0 }
 0x2e3   : > { %v5939_v41 = vpop.f32.mrf.mxu0 }
 0x2e4   : > { %v5940_v44 = vadd.f32 %v5939_v41, %v5938_v40 }
 0x2e5   : > { %v5941_v46 = vpop.f32.mrf.mxu0 }
 0x2e6   : > { %v4816_v47 = vadd.f32 %v5940_v44, %v4776_v43  ;;  %4826 = sbr.rel (%p5386_p13) target bundleno = 757 (0x2f5), region = 52 }
 0x2e7   : > { %v5942_v48 = vpop.f32.mrf.mxu0 }
 0x2e8   : > { %v4821_v49 = vadd.f32 %v4816_v47, %v282_v45 }
 0x2ea   : > { %4822 = vst [vmem:[%s7030_s8] sm:$0x3] %v4821_v49 }
 0x2eb   : > { %v5387_v51 = vld [vmem:[%s242_s18] ss:$0 sm:$0xff] }
 0x2f1   : > { %v4827_v50 = vld [vmem:[%s7030_s8] sm:$0x3] }
 0x2f2   : > { %v4835_v52 = vadd.f32 %v5387_v51, %v4827_v50 }
 0x2f4   : > { %4836 = vst [vmem:[%s7030_s8] sm:$0x3] %v4835_v52 }
 0x2f5 PF: > { %s7609_s3 = sld [smem:[#allocation15_spill]]  ;;  %s4851_s24 = sshll.u32 %s7030_s8, 4  ;;  %s4852_s24 = int_to_ptr.vmem [resolvable:$true] %s4851_s24 }
 0x2f6   : > { %s7610_s20 = sld [smem:[#allocation22_spill]]  ;;  %s4838_s22 = scalar_lea.sflag [#allocation4], %s7022_s1 }
 0x2f7   : > { %s6585_s5 = scalar_lea.vmem %s4852_s24, 32  ;;  %p7612_p6 = scmp.ne.s32.totalorder %s7603_s26, 0 }
 0x2f8   : > { %p6586_p3 = scmp.ne.s32.totalorder %s4852_s24, %s6585_s5  ;;  %s6747_s30 = smov [#allocation8]  }
 0x2f9   : > { %s6589_s21 = sshll.u32 %s6747_s30, 4  ;;  %s6590_s21 = int_to_ptr.vmem [resolvable:$false] %s6589_s21 }
 0x2fa   : > { %p6587_p0 = pnand %p6586_p3, %p7612_p6  ;;  %s6591_s18 = scalar_lea.vmem %s6590_s21, 64 }
 0x2fb   : > { %s5389_s29 = sshll.u32 %s7609_s3, 5  ;;  %p6592_p4 = scmp.lt.s32.totalorder %s4852_s24, %s6590_s21 }
 0x2fc   : > { %s7611_s0 = smov %s7610_s20  ;;  %s4849_s15 = scalar_lea.hbm %s7610_s20, %s5389_s29 }
 0x2fd   : > { %p6588_p7 = pneg %p6587_p0  ;;  %p6593_p1 = scmp.lt.s32.totalorder %s6591_s18, %s6585_s5 }
 0x2ff   : > { %p6594_p12 = por %p6593_p1, %p6592_p4 }
 0x301   : > { %p6595_p9 = pnand %p6594_p12, %p6588_p7 }
 0x303   : > { %6598 = shalt.err (!%p6595_p9)
}
 0x304   : > { %s6599_s4 = scalar_lea.hbm %s4849_s15, 32  ;;  %s6603_s28 = scalar_lea.hbm %s7611_s0, 64 }
 0x305   : > { %p6600_p10 = scmp.ne.s32.totalorder %s4849_s15, %s6599_s4  ;;  %p6604_p5 = scmp.lt.s32.totalorder %s4849_s15, %s7611_s0 }
 0x306   : > { %p6605_p8 = scmp.lt.s32.totalorder %s6603_s28, %s6599_s4 }
 0x307   : > { %p6601_p11 = pnand %p6600_p10, %p7612_p6 }
 0x308   : > { %p6606_p13 = por %p6605_p8, %p6604_p5 }
 0x309   : > { %p6602_p2 = pneg %p6601_p11 }
 0x30b   : > { %p6607_p3 = pnand %p6606_p13, %p6602_p2 }
 0x30d   : > { %6610 = shalt.err (!%p6607_p3)
}
 0x30e   : > { %5954 = dma.vmem_to_hbm [thread:$0]  (%p7612_p6), %s4852_s24, 32, %s4849_s15, %s4838_s22  }
 0x30f PF: > { %p5971_p0 = scmp.ge.s32.totalorder %s6737_s25, 2  ;;  %s4863_s29 = sand.u32 1, %s6685_s12  }
 0x310   : > { %p7613_p7 = scmp.ne.s32.totalorder %s7604_s10, 0  ;;  %s4864_s9 = scalar_lea.sflag [#allocation4], %s4863_s29 }
 0x312   : > { %p5967_p4 = pnand %p5971_p0, %p7613_p7 }
 0x314   : > { %p5968_p1 = pneg %p5967_p4 }
 0x316   : > { %6680 = dma.done.wait (%p5968_p1), %s4864_s9, 32  }
 0x317   : > { %6682 = vsyncadd (%p5968_p1), %s4864_s9, 4294967264  ;;  %s22_s25 = sadd.s32 1, %s6737_s25   ;;  %s7615_s26 = sld [smem:[#allocation13_spill]] }
 0x318   : > { %p7518_p12 = scmp.ge.s32.totalorder %s22_s25, 6   ;;  %s7616_s20 = sld [smem:[#allocation19_spill]] }
 0x319   : > { %s7617_s22 = sld [smem:[#allocation16_spill]]  ;;  %s7620_s12 = smov %s6689_s13 }
 0x31a   : > { %s7618_s10 = sld [smem:[#allocation17_spill]]  ;;  %s7621_s13 = smov %s6693_s14 }
 0x31b   : > { %s7619_s24 = sld [smem:[#allocation18_spill]]  ;;  %s7622_s14 = smov %s6961_s11 }
 0x31c   : > { %s7623_s15 = smov %s6701_s16  ;;  %s7624_s16 = smov %s6705_s17 }
 0x31d   : > { %s7625_s17 = smov %s6936_s27  ;;  %s7626_s18 = smov %s6713_s19 }
 0x31e   : > { %s7627_s19 = smov %s7615_s26  ;;  %s7628_s21 = smov %s6729_s23 }
 0x31f   :  { %21 = sbr.rel (!%p7518_p12) target bundleno = 16 (0x10), region = 109 }
 0x320   : > { %s7629_s23 = smov %s7618_s10 }
 0x324   :  { %4869 = vsyncpa [#allocation3], 1 }
 0x325   :  { %4871 = vsyncpa [#allocation3 + $0x1], 1 }
 0x326   :  { %4872 = vsyncpa [#allocation6], 1 }
 0x327   :  { %4874 = vsyncpa [#allocation6 + $0x1], 1 }
 0x328   :  { %4875 = vsyncpa [#allocation4], 1 }
 0x329   :  { %4877 = vsyncpa [#allocation4 + $0x1], 1 }

</bundles_post_ra>
